<compile_context>
chip_gen: v7x
topology: tpu7x:2x2x1
jax: 0.10.0
libtpu: 0.0.40
codegen_flags: <defaults>
</compile_context>

<pallas_src>
import functools

import jax
import jax.numpy as jnp
from jax.experimental import pallas as pl
from jax.experimental.pallas import tpu as pltpu

_EPS = 1e-20
_HIDDEN = 300                      # hard-coded in the PyTorch module
_VMEM_LIMIT = 32 * 1024 * 1024     # safe on v5e / v6e / v7x at these tile sizes
_NEG = -1e30


def _round_up(x, m):
    return ((x + m - 1) // m) * m


def _pick_row_tile(rows_padded, max_tile=512):
    """Largest multiple-of-8 divisor of rows_padded that is <= max_tile."""
    for t in range(min(rows_padded, max_tile), 7, -8):
        if rows_padded % t == 0:
            return t
    return 8


# -----------------------------------------------------------------------------
# Kernel 1: fused encoder MLP  (Linear -> ReLU -> Linear), bf16 MXU / f32 acc.
# -----------------------------------------------------------------------------
def _encoder_kernel(x_ref, w1_ref, b1_ref, w2_ref, b2_ref, o_ref):
    x = x_ref[...].astype(w1_ref.dtype)                       # bf16 for the MXU
    h = jnp.dot(x, w1_ref[...], preferred_element_type=jnp.float32)
    h = jnp.maximum(h + b1_ref[...], 0.0)                     # bias/ReLU in f32
    o = jnp.dot(h.astype(w2_ref.dtype), w2_ref[...],
                preferred_element_type=jnp.float32) + b2_ref[...]
    o_ref[...] = o.astype(o_ref.dtype)


def _encoder(x, p, *, tile_b):
    m, d_in = x.shape
    hp = p["enc_w1"].shape[1]
    nkp = p["enc_w2"].shape[1]
    nb = m // tile_b
    flops = 2 * m * (d_in * hp + hp * nkp)
    bytes_accessed = (4 * m * d_in + 2 * (d_in * hp + hp * nkp)
                      + 4 * (hp + nkp) + 4 * m * nkp)
    return pl.pallas_call(
        _encoder_kernel,
        out_shape=jax.ShapeDtypeStruct((m, nkp), jnp.float32),
        grid_spec=pltpu.PrefetchScalarGridSpec(
            num_scalar_prefetch=0,
            grid=(nb,),
            in_specs=[
                pl.BlockSpec((tile_b, d_in), lambda i: (i, 0)),
                pl.BlockSpec((d_in, hp), lambda i: (0, 0)),
                pl.BlockSpec((1, hp), lambda i: (0, 0)),
                pl.BlockSpec((hp, nkp), lambda i: (0, 0)),
                pl.BlockSpec((1, nkp), lambda i: (0, 0)),
            ],
            out_specs=pl.BlockSpec((tile_b, nkp), lambda i: (i, 0)),
        ),
        compiler_params=pltpu.CompilerParams(
            dimension_semantics=("parallel",),
            vmem_limit_bytes=_VMEM_LIMIT),
        cost_estimate=pl.CostEstimate(flops=flops, transcendentals=0,
                                      bytes_accessed=bytes_accessed),
    )(x, p["enc_w1"], p["enc_b1"], p["enc_w2"], p["enc_b2"])


# -----------------------------------------------------------------------------
# Kernel 2: fused gumbel-softmax (soft path) + composed decoder MLP.
# Works on the lane-dense (tile, N*K padded to 128) layout; the per-K-group
# softmax is done with lane masks (N is tiny and static -> unrolled loops).
# The logits block is selected by index_map only (replication across M is
# free -- no HBM copy).
# -----------------------------------------------------------------------------
def _gumbel_decoder_kernel(logits_ref, u_ref, w1_ref, b1_ref, w2_ref, b2_ref,
                           o_ref, *, N, K, inv_tau):
    nk = N * K
    tile, nkp = u_ref.shape

    # gumbel noise + temperature (all f32 VPU/EUP work)
    g = -jnp.log(_EPS - jnp.log(u_ref[...] + _EPS))            # exact torch formula
    z = (logits_ref[...] + g) * inv_tau

    col = jax.lax.broadcasted_iota(jnp.int32, (tile, nkp), 1)
    valid = col < nk                                           # mask out pad lanes

    # per-group max (stabilization), kept lane-dense
    maxes = jnp.zeros_like(z)
    for n in range(N):
        msk = (col >= n * K) & (col < (n + 1) * K)
        gmax = jnp.max(jnp.where(msk, z, _NEG), axis=-1, keepdims=True)
        maxes = jnp.where(msk, gmax, maxes)
    e = jnp.exp(jnp.where(valid, z - maxes, _NEG))             # pad lanes -> 0

    # per-group sums -> softmax
    denom = jnp.zeros_like(z)
    for n in range(N):
        msk = (col >= n * K) & (col < (n + 1) * K)
        gsum = jnp.sum(jnp.where(msk, e, 0.0), axis=-1, keepdims=True)
        denom = jnp.where(msk, gsum, denom)
    denom = jnp.where(valid, denom, 1.0)                       # keep pad lanes finite
    y = e * pl.reciprocal(denom, approx=True)

    # fused composed decoder: Linear -> ReLU -> Linear (bf16 MXU, f32 acc)
    h = jnp.dot(y.astype(w1_ref.dtype), w1_ref[...],
                preferred_element_type=jnp.float32)
    h = jnp.maximum(h + b1_ref[...], 0.0)
    o = jnp.dot(h.astype(w2_ref.dtype), w2_ref[...],
                preferred_element_type=jnp.float32) + b2_ref[...]
    o_ref[...] = o.astype(o_ref.dtype)


def _gumbel_decoder(logits_full, u, p, *, N, K, M, tau, tile_b):
    b_pad, nkp = logits_full.shape
    nb = b_pad // tile_b
    hp = p["dec_w1"].shape[1]
    d_out = p["dec_w2"].shape[1]
    rows = M * b_pad
    flops = 2 * rows * (nkp * hp + hp * d_out)
    transcendentals = 4 * rows * nkp
    bytes_accessed = (4 * rows * nkp + 4 * b_pad * nkp
                      + 2 * (nkp * hp + hp * d_out) + 4 * (hp + d_out)
                      + 4 * rows * d_out)
    kernel = functools.partial(_gumbel_decoder_kernel, N=N, K=K,
                               inv_tau=1.0 / tau)
    return pl.pallas_call(
        kernel,
        out_shape=jax.ShapeDtypeStruct((rows, d_out), jnp.float32),
        grid_spec=pltpu.PrefetchScalarGridSpec(
            num_scalar_prefetch=0,
            grid=(M, nb),
            in_specs=[
                # logits replicated across M purely via the index_map
                pl.BlockSpec((tile_b, nkp), lambda m, j: (j, 0)),
                pl.BlockSpec((tile_b, nkp), lambda m, j: (m * nb + j, 0)),
                pl.BlockSpec((nkp, hp), lambda m, j: (0, 0)),
                pl.BlockSpec((1, hp), lambda m, j: (0, 0)),
                pl.BlockSpec((hp, d_out), lambda m, j: (0, 0)),
                pl.BlockSpec((1, d_out), lambda m, j: (0, 0)),
            ],
            out_specs=pl.BlockSpec((tile_b, d_out),
                                   lambda m, j: (m * nb + j, 0)),
        ),
        compiler_params=pltpu.CompilerParams(
            dimension_semantics=("parallel", "parallel"),
            vmem_limit_bytes=_VMEM_LIMIT),
        cost_estimate=pl.CostEstimate(flops=flops,
                                      transcendentals=transcendentals,
                                      bytes_accessed=bytes_accessed),
    )(logits_full, u, p["dec_w1"], p["dec_b1"], p["dec_w2"], p["dec_b2"])


# -----------------------------------------------------------------------------
# Parameter prep: zero-pad feature dims to lane-friendly sizes and cast matmul
# weights to bf16 (biases stay f32).  Zero padding is numerically exact:
# padded hidden units see zero weight + zero bias -> ReLU(0)=0 -> contribute 0;
# padded logit columns get zero weight/bias and are masked in the kernel.
# -----------------------------------------------------------------------------
def prepare_params(raw, *, N, K, hidden=_HIDDEN):
    nk = N * K
    nkp = _round_up(nk, 128)
    hp = _round_up(hidden, 128)

    def pad2(a, r, c):
        return jnp.pad(a, ((0, r - a.shape[0]), (0, c - a.shape[1])))

    d_in = raw["enc_w1"].shape[0]
    d_out = raw["dec_w2"].shape[1]
    return dict(
        enc_w1=pad2(raw["enc_w1"], d_in, hp).astype(jnp.bfloat16),
        enc_b1=pad2(raw["enc_b1"], 1, hp).astype(jnp.float32),
        enc_w2=pad2(raw["enc_w2"], hp, nkp).astype(jnp.bfloat16),
        enc_b2=pad2(raw["enc_b2"], 1, nkp).astype(jnp.float32),
        dec_w1=pad2(raw["dec_w1"], nkp, hp).astype(jnp.bfloat16),
        dec_b1=pad2(raw["dec_b1"], 1, hp).astype(jnp.float32),
        dec_w2=pad2(raw["dec_w2"], hp, d_out).astype(jnp.bfloat16),
        dec_b2=raw["dec_b2"].astype(jnp.float32),
    )


def noise_shape(batch, *, N, K, M):
    """Shape of the uniform [0,1) noise tensor consumed by vae_forward."""
    b_pad = _round_up(batch, 8)
    return (M * b_pad, _round_up(N * K, 128))


# -----------------------------------------------------------------------------
# Full VAE forward (composed decoder, training-mode soft sampling).
# Returns (out, logits) exactly like the PyTorch module:
#   out:    (M*B, image_size) f32
#   logits: (B*N, K) f32
# -----------------------------------------------------------------------------
def vae_forward(x, params, u, *, N, K, M, tau):
    B, _ = x.shape
    nk = N * K
    nkp = params["enc_w2"].shape[1]
    b_pad = _round_up(B, 8)
    tile_b = _pick_row_tile(b_pad)
    assert u.shape == (M * b_pad, nkp), (u.shape, (M * b_pad, nkp))

    x_in = x if b_pad == B else jnp.pad(x, ((0, b_pad - B), (0, 0)))

    # encoder: Linear(image_size,300) -> ReLU -> Linear(300, N*K)
    logits_full = _encoder(x_in, params, tile_b=tile_b)          # (b_pad, nkp) f32

    # gumbel-softmax (soft) + composed decoder, fused; M replication via index_map
    out = _gumbel_decoder(logits_full, u, params,
                          N=N, K=K, M=M, tau=tau, tile_b=tile_b)  # (M*b_pad, D)

    logits = logits_full[:B, :nk].reshape(B * N, K)               # .view(-1, K)
    if b_pad != B:
        d_out = out.shape[1]
        out = out.reshape(M, b_pad, d_out)[:, :B, :].reshape(M * B, d_out)
    return out, logits


if __name__ == "__main__":
    import numpy as np

    # Small but module-consistent shapes.
    image_size = 256      # in place of 784 (kept a multiple of 128)
    hidden = _HIDDEN      # 300, hard-coded in the module (padded to 384 internally)
    N, K, M = 6, 6, 4     # M shrunk from 20 for a small example
    tau = 1.0
    B = 8

    key = jax.random.PRNGKey(0)
    ks = jax.random.split(key, 10)

    def linear_init(kw, kb, fan_in, fan_out):
        bound = 1.0 / (fan_in ** 0.5)
        w = jax.random.uniform(kw, (fan_in, fan_out), jnp.float32, -bound, bound)
        b = jax.random.uniform(kb, (1, fan_out), jnp.float32, -bound, bound)
        return w, b

    enc_w1, enc_b1 = linear_init(ks[0], ks[1], image_size, hidden)
    enc_w2, enc_b2 = linear_init(ks[2], ks[3], hidden, N * K)
    dec_w1, dec_b1 = linear_init(ks[4], ks[5], N * K, hidden)
    dec_w2, dec_b2 = linear_init(ks[6], ks[7], hidden, image_size)
    raw = dict(enc_w1=enc_w1, enc_b1=enc_b1, enc_w2=enc_w2, enc_b2=enc_b2,
               dec_w1=dec_w1, dec_b1=dec_b1, dec_w2=dec_w2, dec_b2=dec_b2)
    params = prepare_params(raw, N=N, K=K, hidden=hidden)

    x = jax.random.uniform(ks[8], (B, image_size), jnp.float32)
    u = jax.random.uniform(ks[9], noise_shape(B, N=N, K=K, M=M), jnp.float32)

    fwd = jax.jit(functools.partial(vae_forward, N=N, K=K, M=M, tau=tau))
    out, logits = fwd(x, params, u)
    jax.block_until_ready((out, logits))

    # --- pure-JAX f32 reference (same noise, same math) ---------------------
    b_pad = _round_up(B, 8)
    nk = N * K
    h_ref = jnp.maximum(x @ enc_w1 + enc_b1, 0.0)
    logits_ref_full = h_ref @ enc_w2 + enc_b2                       # (B, NK)
    u_v = u.reshape(M, b_pad, -1)[:, :B, :nk]                       # (M, B, NK)
    g_ref = -jnp.log(_EPS - jnp.log(u_v + _EPS))
    z_ref = (logits_ref_full[None] + g_ref) / tau
    y_ref = jax.nn.softmax(z_ref.reshape(M, B, N, K), axis=-1).reshape(M * B, nk)
    out_ref = jnp.maximum(y_ref @ dec_w1 + dec_b1, 0.0) @ dec_w2 + dec_b2
    logits_ref = logits_ref_full.reshape(B * N, K)

    assert out.shape == (M * B, image_size), out.shape
    assert logits.shape == (B * N, K), logits.shape
    assert bool(jnp.all(jnp.isfinite(out))) and bool(jnp.all(jnp.isfinite(logits)))
    np.testing.assert_allclose(np.asarray(logits), np.asarray(logits_ref),
                               atol=5e-2, rtol=5e-2)
    np.testing.assert_allclose(np.asarray(out), np.asarray(out_ref),
                               atol=5e-2, rtol=5e-2)
    print("KERNEL_OK")
</pallas_src>

<mosaic_0001>
module attributes {stable_mosaic.version = 11 : i64} {
  func.func @_encoder_kernel(%arg0: i32, %arg1: memref<8x256xf32, #tpu.memory_space<vmem>>, %arg2: memref<256x384xbf16, #tpu.memory_space<vmem>>, %arg3: memref<1x384xf32, #tpu.memory_space<vmem>>, %arg4: memref<384x128xbf16, #tpu.memory_space<vmem>>, %arg5: memref<1x128xf32, #tpu.memory_space<vmem>>, %arg6: memref<8x128xf32, #tpu.memory_space<vmem>>) attributes {dimension_semantics = [#tpu.dimension_semantics<parallel>], iteration_bounds = array<i64: 1>, scalar_prefetch = 0 : i64, scratch_operands = 0 : i64, tpu.core_type = #tpu.core_type<tc>, window_params = [{transform_indices = @transform_0, window_bounds = array<i64: 8, 256>}, {pipeline_mode = #tpu.pipeline_mode<synchronous>, transform_indices = @transform_1, window_bounds = array<i64: 256, 384>}, {pipeline_mode = #tpu.pipeline_mode<synchronous>, transform_indices = @transform_2, window_bounds = array<i64: 1, 384>}, {pipeline_mode = #tpu.pipeline_mode<synchronous>, transform_indices = @transform_3, window_bounds = array<i64: 384, 128>}, {pipeline_mode = #tpu.pipeline_mode<synchronous>, transform_indices = @transform_4, window_bounds = array<i64: 1, 128>}, {transform_indices = @transform_5, window_bounds = array<i64: 8, 128>}]} {
    %c0 = arith.constant 0 : index
    %c0_0 = arith.constant 0 : index
    %0 = vector.load %arg1[%c0, %c0_0] : memref<8x256xf32, #tpu.memory_space<vmem>>, vector<8x256xf32>
    %1 = arith.truncf %0 : vector<8x256xf32> to vector<8x256xbf16>
    %c0_1 = arith.constant 0 : index
    %c0_2 = arith.constant 0 : index
    %2 = vector.load %arg2[%c0_1, %c0_2] : memref<256x384xbf16, #tpu.memory_space<vmem>>, vector<256x384xbf16>
    %cst = arith.constant dense<0.000000e+00> : vector<8x384xf32>
    %3 = tpu.matmul %1, %2, %cst {dimension_numbers = #tpu.dot_dimension_numbers<[1], [0], [0], [1], [0, 0, 1, 1], [], []>} : vector<8x256xbf16>, vector<256x384xbf16>, vector<8x384xf32> -> vector<8x384xf32>
    %c0_3 = arith.constant 0 : index
    %c0_4 = arith.constant 0 : index
    %4 = vector.load %arg3[%c0_3, %c0_4] : memref<1x384xf32, #tpu.memory_space<vmem>>, vector<1x384xf32>
    %5 = vector.broadcast %4 : vector<1x384xf32> to vector<8x384xf32>
    %6 = arith.addf %3, %5 : vector<8x384xf32>
    %cst_5 = arith.constant 0.000000e+00 : f32
    %7 = vector.broadcast %cst_5 : f32 to vector<8x384xf32>
    %8 = arith.maximumf %6, %7 : vector<8x384xf32>
    %9 = arith.truncf %8 : vector<8x384xf32> to vector<8x384xbf16>
    %c0_6 = arith.constant 0 : index
    %c0_7 = arith.constant 0 : index
    %10 = vector.load %arg4[%c0_6, %c0_7] : memref<384x128xbf16, #tpu.memory_space<vmem>>, vector<384x128xbf16>
    %cst_8 = arith.constant dense<0.000000e+00> : vector<8x128xf32>
    %11 = tpu.matmul %9, %10, %cst_8 {dimension_numbers = #tpu.dot_dimension_numbers<[1], [0], [0], [1], [0, 0, 1, 1], [], []>} : vector<8x384xbf16>, vector<384x128xbf16>, vector<8x128xf32> -> vector<8x128xf32>
    %c0_9 = arith.constant 0 : index
    %c0_10 = arith.constant 0 : index
    %12 = vector.load %arg5[%c0_9, %c0_10] : memref<1x128xf32, #tpu.memory_space<vmem>>, vector<1x128xf32>
    %13 = vector.broadcast %12 : vector<1x128xf32> to vector<8x128xf32>
    %14 = arith.addf %11, %13 : vector<8x128xf32>
    %c0_11 = arith.constant 0 : index
    %c0_12 = arith.constant 0 : index
    %15 = vector.load %arg6[%c0_11, %c0_12] : memref<8x128xf32, #tpu.memory_space<vmem>>, vector<8x128xf32>
    tpu.vector_store %arg6[%c0_11, %c0_12], %14 {strides = array<i32>} : memref<8x128xf32, #tpu.memory_space<vmem>>, vector<8x128xf32>,
    return
  }
  func.func @transform_0(%arg0: i32) -> (i32, i32) {
    %c0_i32 = arith.constant 0 : i32
    %c0_i32_0 = arith.constant 0 : i32
    return %arg0, %c0_i32 : i32, i32
  }
  func.func @transform_1(%arg0: i32) -> (i32, i32) {
    %c0_i32 = arith.constant 0 : i32
    %c0_i32_0 = arith.constant 0 : i32
    %c0_i32_1 = arith.constant 0 : i32
    return %c0_i32, %c0_i32_0 : i32, i32
  }
  func.func @transform_2(%arg0: i32) -> (i32, i32) {
    %c0_i32 = arith.constant 0 : i32
    %c0_i32_0 = arith.constant 0 : i32
    %c0_i32_1 = arith.constant 0 : i32
    return %c0_i32, %c0_i32_0 : i32, i32
  }
  func.func @transform_3(%arg0: i32) -> (i32, i32) {
    %c0_i32 = arith.constant 0 : i32
    %c0_i32_0 = arith.constant 0 : i32
    %c0_i32_1 = arith.constant 0 : i32
    return %c0_i32, %c0_i32_0 : i32, i32
  }
  func.func @transform_4(%arg0: i32) -> (i32, i32) {
    %c0_i32 = arith.constant 0 : i32
    %c0_i32_0 = arith.constant 0 : i32
    %c0_i32_1 = arith.constant 0 : i32
    return %c0_i32, %c0_i32_0 : i32, i32
  }
  func.func @transform_5(%arg0: i32) -> (i32, i32) {
    %c0_i32 = arith.constant 0 : i32
    %c0_i32_0 = arith.constant 0 : i32
    return %arg0, %c0_i32 : i32, i32
  }
}

module attributes {stable_mosaic.version = 11 : i64} {
  func.func @_gumbel_decoder_kernel(%arg0: i32, %arg1: i32, %arg2: memref<8x128xf32, #tpu.memory_space<vmem>>, %arg3: memref<8x128xf32, #tpu.memory_space<vmem>>, %arg4: memref<128x384xbf16, #tpu.memory_space<vmem>>, %arg5: memref<1x384xf32, #tpu.memory_space<vmem>>, %arg6: memref<384x256xbf16, #tpu.memory_space<vmem>>, %arg7: memref<1x256xf32, #tpu.memory_space<vmem>>, %arg8: memref<8x256xf32, #tpu.memory_space<vmem>>) attributes {dimension_semantics = [#tpu.dimension_semantics<parallel>, #tpu.dimension_semantics<parallel>], iteration_bounds = array<i64: 4, 1>, scalar_prefetch = 0 : i64, scratch_operands = 0 : i64, tpu.core_type = #tpu.core_type<tc>, window_params = [{transform_indices = @transform_0, window_bounds = array<i64: 8, 128>}, {transform_indices = @transform_1, window_bounds = array<i64: 8, 128>}, {pipeline_mode = #tpu.pipeline_mode<synchronous>, transform_indices = @transform_2, window_bounds = array<i64: 128, 384>}, {pipeline_mode = #tpu.pipeline_mode<synchronous>, transform_indices = @transform_3, window_bounds = array<i64: 1, 384>}, {pipeline_mode = #tpu.pipeline_mode<synchronous>, transform_indices = @transform_4, window_bounds = array<i64: 384, 256>}, {pipeline_mode = #tpu.pipeline_mode<synchronous>, transform_indices = @transform_5, window_bounds = array<i64: 1, 256>}, {transform_indices = @transform_6, window_bounds = array<i64: 8, 256>}]} {
    %c0 = arith.constant 0 : index
    %c0_0 = arith.constant 0 : index
    %0 = vector.load %arg3[%c0, %c0_0] : memref<8x128xf32, #tpu.memory_space<vmem>>, vector<8x128xf32>
    %cst = arith.constant 9.99999968E-21 : f32
    %1 = vector.broadcast %cst : f32 to vector<8x128xf32>
    %2 = arith.addf %0, %1 : vector<8x128xf32>
    %3 = math.log %2 : vector<8x128xf32>
    %cst_1 = arith.constant 9.99999968E-21 : f32
    %4 = vector.broadcast %cst_1 : f32 to vector<8x128xf32>
    %5 = arith.subf %4, %3 : vector<8x128xf32>
    %6 = math.log %5 : vector<8x128xf32>
    %cst_2 = arith.constant 0.000000e+00 : f32
    %7 = vector.broadcast %cst_2 : f32 to vector<8x128xf32>
    %8 = arith.subf %7, %6 : vector<8x128xf32>
    %c0_3 = arith.constant 0 : index
    %c0_4 = arith.constant 0 : index
    %9 = vector.load %arg2[%c0_3, %c0_4] : memref<8x128xf32, #tpu.memory_space<vmem>>, vector<8x128xf32>
    %10 = arith.addf %9, %8 : vector<8x128xf32>
    %cst_5 = arith.constant 1.000000e+00 : f32
    %11 = vector.broadcast %cst_5 : f32 to vector<8x128xf32>
    %12 = arith.mulf %10, %11 : vector<8x128xf32>
    %13 = tpu.iota {dimensions = array<i32: 1>} : vector<8x128xi32>
    %c36_i32 = arith.constant 36 : i32
    %14 = vector.broadcast %c36_i32 : i32 to vector<8x128xi32>
    %15 = arith.cmpi slt, %13, %14 : vector<8x128xi32>
    %cst_6 = arith.constant 0.000000e+00 : f32
    %16 = vector.broadcast %cst_6 : f32 to vector<8x128xf32>
    %c0_i32 = arith.constant 0 : i32
    %17 = vector.broadcast %c0_i32 : i32 to vector<8x128xi32>
    %18 = arith.cmpi sge, %13, %17 : vector<8x128xi32>
    %c6_i32 = arith.constant 6 : i32
    %19 = vector.broadcast %c6_i32 : i32 to vector<8x128xi32>
    %20 = arith.cmpi slt, %13, %19 : vector<8x128xi32>
    %21 = arith.andi %18, %20 : vector<8x128xi1>
    %cst_7 = arith.constant -1.000000e+30 : f32
    %22 = vector.broadcast %cst_7 : f32 to vector<8x128xf32>
    %23 = arith.select %21, %12, %22 : vector<8x128xi1>, vector<8x128xf32>
    %cst_8 = arith.constant dense<0xFF800000> : vector<8xf32>
    %24 = vector.multi_reduction <maximumf>, %23, %cst_8 [1] : vector<8x128xf32> to vector<8xf32>
    %25 = vector.shape_cast %24 : vector<8xf32> to vector<8x1xf32>
    %26 = vector.shape_cast %25 : vector<8x1xf32> to vector<8x1xf32>
    %27 = vector.broadcast %26 : vector<8x1xf32> to vector<8x128xf32>
    %28 = arith.select %21, %27, %16 : vector<8x128xi1>, vector<8x128xf32>
    %c6_i32_9 = arith.constant 6 : i32
    %29 = vector.broadcast %c6_i32_9 : i32 to vector<8x128xi32>
    %30 = arith.cmpi sge, %13, %29 : vector<8x128xi32>
    %c12_i32 = arith.constant 12 : i32
    %31 = vector.broadcast %c12_i32 : i32 to vector<8x128xi32>
    %32 = arith.cmpi slt, %13, %31 : vector<8x128xi32>
    %33 = arith.andi %30, %32 : vector<8x128xi1>
    %cst_10 = arith.constant -1.000000e+30 : f32
    %34 = vector.broadcast %cst_10 : f32 to vector<8x128xf32>
    %35 = arith.select %33, %12, %34 : vector<8x128xi1>, vector<8x128xf32>
    %cst_11 = arith.constant dense<0xFF800000> : vector<8xf32>
    %36 = vector.multi_reduction <maximumf>, %35, %cst_11 [1] : vector<8x128xf32> to vector<8xf32>
    %37 = vector.shape_cast %36 : vector<8xf32> to vector<8x1xf32>
    %38 = vector.shape_cast %37 : vector<8x1xf32> to vector<8x1xf32>
    %39 = vector.broadcast %38 : vector<8x1xf32> to vector<8x128xf32>
    %40 = arith.select %33, %39, %28 : vector<8x128xi1>, vector<8x128xf32>
    %c12_i32_12 = arith.constant 12 : i32
    %41 = vector.broadcast %c12_i32_12 : i32 to vector<8x128xi32>
    %42 = arith.cmpi sge, %13, %41 : vector<8x128xi32>
    %c18_i32 = arith.constant 18 : i32
    %43 = vector.broadcast %c18_i32 : i32 to vector<8x128xi32>
    %44 = arith.cmpi slt, %13, %43 : vector<8x128xi32>
    %45 = arith.andi %42, %44 : vector<8x128xi1>
    %cst_13 = arith.constant -1.000000e+30 : f32
    %46 = vector.broadcast %cst_13 : f32 to vector<8x128xf32>
    %47 = arith.select %45, %12, %46 : vector<8x128xi1>, vector<8x128xf32>
    %cst_14 = arith.constant dense<0xFF800000> : vector<8xf32>
    %48 = vector.multi_reduction <maximumf>, %47, %cst_14 [1] : vector<8x128xf32> to vector<8xf32>
    %49 = vector.shape_cast %48 : vector<8xf32> to vector<8x1xf32>
    %50 = vector.shape_cast %49 : vector<8x1xf32> to vector<8x1xf32>
    %51 = vector.broadcast %50 : vector<8x1xf32> to vector<8x128xf32>
    %52 = arith.select %45, %51, %40 : vector<8x128xi1>, vector<8x128xf32>
    %c18_i32_15 = arith.constant 18 : i32
    %53 = vector.broadcast %c18_i32_15 : i32 to vector<8x128xi32>
    %54 = arith.cmpi sge, %13, %53 : vector<8x128xi32>
    %c24_i32 = arith.constant 24 : i32
    %55 = vector.broadcast %c24_i32 : i32 to vector<8x128xi32>
    %56 = arith.cmpi slt, %13, %55 : vector<8x128xi32>
    %57 = arith.andi %54, %56 : vector<8x128xi1>
    %cst_16 = arith.constant -1.000000e+30 : f32
    %58 = vector.broadcast %cst_16 : f32 to vector<8x128xf32>
    %59 = arith.select %57, %12, %58 : vector<8x128xi1>, vector<8x128xf32>
    %cst_17 = arith.constant dense<0xFF800000> : vector<8xf32>
    %60 = vector.multi_reduction <maximumf>, %59, %cst_17 [1] : vector<8x128xf32> to vector<8xf32>
    %61 = vector.shape_cast %60 : vector<8xf32> to vector<8x1xf32>
    %62 = vector.shape_cast %61 : vector<8x1xf32> to vector<8x1xf32>
    %63 = vector.broadcast %62 : vector<8x1xf32> to vector<8x128xf32>
    %64 = arith.select %57, %63, %52 : vector<8x128xi1>, vector<8x128xf32>
    %c24_i32_18 = arith.constant 24 : i32
    %65 = vector.broadcast %c24_i32_18 : i32 to vector<8x128xi32>
    %66 = arith.cmpi sge, %13, %65 : vector<8x128xi32>
    %c30_i32 = arith.constant 30 : i32
    %67 = vector.broadcast %c30_i32 : i32 to vector<8x128xi32>
    %68 = arith.cmpi slt, %13, %67 : vector<8x128xi32>
    %69 = arith.andi %66, %68 : vector<8x128xi1>
    %cst_19 = arith.constant -1.000000e+30 : f32
    %70 = vector.broadcast %cst_19 : f32 to vector<8x128xf32>
    %71 = arith.select %69, %12, %70 : vector<8x128xi1>, vector<8x128xf32>
    %cst_20 = arith.constant dense<0xFF800000> : vector<8xf32>
    %72 = vector.multi_reduction <maximumf>, %71, %cst_20 [1] : vector<8x128xf32> to vector<8xf32>
    %73 = vector.shape_cast %72 : vector<8xf32> to vector<8x1xf32>
    %74 = vector.shape_cast %73 : vector<8x1xf32> to vector<8x1xf32>
    %75 = vector.broadcast %74 : vector<8x1xf32> to vector<8x128xf32>
    %76 = arith.select %69, %75, %64 : vector<8x128xi1>, vector<8x128xf32>
    %c30_i32_21 = arith.constant 30 : i32
    %77 = vector.broadcast %c30_i32_21 : i32 to vector<8x128xi32>
    %78 = arith.cmpi sge, %13, %77 : vector<8x128xi32>
    %c36_i32_22 = arith.constant 36 : i32
    %79 = vector.broadcast %c36_i32_22 : i32 to vector<8x128xi32>
    %80 = arith.cmpi slt, %13, %79 : vector<8x128xi32>
    %81 = arith.andi %78, %80 : vector<8x128xi1>
    %cst_23 = arith.constant -1.000000e+30 : f32
    %82 = vector.broadcast %cst_23 : f32 to vector<8x128xf32>
    %83 = arith.select %81, %12, %82 : vector<8x128xi1>, vector<8x128xf32>
    %cst_24 = arith.constant dense<0xFF800000> : vector<8xf32>
    %84 = vector.multi_reduction <maximumf>, %83, %cst_24 [1] : vector<8x128xf32> to vector<8xf32>
    %85 = vector.shape_cast %84 : vector<8xf32> to vector<8x1xf32>
    %86 = vector.shape_cast %85 : vector<8x1xf32> to vector<8x1xf32>
    %87 = vector.broadcast %86 : vector<8x1xf32> to vector<8x128xf32>
    %88 = arith.select %81, %87, %76 : vector<8x128xi1>, vector<8x128xf32>
    %89 = arith.subf %12, %88 : vector<8x128xf32>
    %cst_25 = arith.constant -1.000000e+30 : f32
    %90 = vector.broadcast %cst_25 : f32 to vector<8x128xf32>
    %91 = arith.select %15, %89, %90 : vector<8x128xi1>, vector<8x128xf32>
    %92 = math.exp %91 : vector<8x128xf32>
    %cst_26 = arith.constant 0.000000e+00 : f32
    %93 = vector.broadcast %cst_26 : f32 to vector<8x128xf32>
    %c0_i32_27 = arith.constant 0 : i32
    %94 = vector.broadcast %c0_i32_27 : i32 to vector<8x128xi32>
    %95 = arith.cmpi sge, %13, %94 : vector<8x128xi32>
    %c6_i32_28 = arith.constant 6 : i32
    %96 = vector.broadcast %c6_i32_28 : i32 to vector<8x128xi32>
    %97 = arith.cmpi slt, %13, %96 : vector<8x128xi32>
    %98 = arith.andi %95, %97 : vector<8x128xi1>
    %cst_29 = arith.constant 0.000000e+00 : f32
    %99 = vector.broadcast %cst_29 : f32 to vector<8x128xf32>
    %100 = arith.select %98, %92, %99 : vector<8x128xi1>, vector<8x128xf32>
    %cst_30 = arith.constant dense<0.000000e+00> : vector<8xf32>
    %101 = vector.multi_reduction <add>, %100, %cst_30 [1] : vector<8x128xf32> to vector<8xf32>
    %102 = vector.shape_cast %101 : vector<8xf32> to vector<8x1xf32>
    %103 = vector.shape_cast %102 : vector<8x1xf32> to vector<8x1xf32>
    %104 = vector.broadcast %103 : vector<8x1xf32> to vector<8x128xf32>
    %105 = arith.select %98, %104, %93 : vector<8x128xi1>, vector<8x128xf32>
    %c6_i32_31 = arith.constant 6 : i32
    %106 = vector.broadcast %c6_i32_31 : i32 to vector<8x128xi32>
    %107 = arith.cmpi sge, %13, %106 : vector<8x128xi32>
    %c12_i32_32 = arith.constant 12 : i32
    %108 = vector.broadcast %c12_i32_32 : i32 to vector<8x128xi32>
    %109 = arith.cmpi slt, %13, %108 : vector<8x128xi32>
    %110 = arith.andi %107, %109 : vector<8x128xi1>
    %cst_33 = arith.constant 0.000000e+00 : f32
    %111 = vector.broadcast %cst_33 : f32 to vector<8x128xf32>
    %112 = arith.select %110, %92, %111 : vector<8x128xi1>, vector<8x128xf32>
    %cst_34 = arith.constant dense<0.000000e+00> : vector<8xf32>
    %113 = vector.multi_reduction <add>, %112, %cst_34 [1] : vector<8x128xf32> to vector<8xf32>
    %114 = vector.shape_cast %113 : vector<8xf32> to vector<8x1xf32>
    %115 = vector.shape_cast %114 : vector<8x1xf32> to vector<8x1xf32>
    %116 = vector.broadcast %115 : vector<8x1xf32> to vector<8x128xf32>
    %117 = arith.select %110, %116, %105 : vector<8x128xi1>, vector<8x128xf32>
    %c12_i32_35 = arith.constant 12 : i32
    %118 = vector.broadcast %c12_i32_35 : i32 to vector<8x128xi32>
    %119 = arith.cmpi sge, %13, %118 : vector<8x128xi32>
    %c18_i32_36 = arith.constant 18 : i32
    %120 = vector.broadcast %c18_i32_36 : i32 to vector<8x128xi32>
    %121 = arith.cmpi slt, %13, %120 : vector<8x128xi32>
    %122 = arith.andi %119, %121 : vector<8x128xi1>
    %cst_37 = arith.constant 0.000000e+00 : f32
    %123 = vector.broadcast %cst_37 : f32 to vector<8x128xf32>
    %124 = arith.select %122, %92, %123 : vector<8x128xi1>, vector<8x128xf32>
    %cst_38 = arith.constant dense<0.000000e+00> : vector<8xf32>
    %125 = vector.multi_reduction <add>, %124, %cst_38 [1] : vector<8x128xf32> to vector<8xf32>
    %126 = vector.shape_cast %125 : vector<8xf32> to vector<8x1xf32>
    %127 = vector.shape_cast %126 : vector<8x1xf32> to vector<8x1xf32>
    %128 = vector.broadcast %127 : vector<8x1xf32> to vector<8x128xf32>
    %129 = arith.select %122, %128, %117 : vector<8x128xi1>, vector<8x128xf32>
    %c18_i32_39 = arith.constant 18 : i32
    %130 = vector.broadcast %c18_i32_39 : i32 to vector<8x128xi32>
    %131 = arith.cmpi sge, %13, %130 : vector<8x128xi32>
    %c24_i32_40 = arith.constant 24 : i32
    %132 = vector.broadcast %c24_i32_40 : i32 to vector<8x128xi32>
    %133 = arith.cmpi slt, %13, %132 : vector<8x128xi32>
    %134 = arith.andi %131, %133 : vector<8x128xi1>
    %cst_41 = arith.constant 0.000000e+00 : f32
    %135 = vector.broadcast %cst_41 : f32 to vector<8x128xf32>
    %136 = arith.select %134, %92, %135 : vector<8x128xi1>, vector<8x128xf32>
    %cst_42 = arith.constant dense<0.000000e+00> : vector<8xf32>
    %137 = vector.multi_reduction <add>, %136, %cst_42 [1] : vector<8x128xf32> to vector<8xf32>
    %138 = vector.shape_cast %137 : vector<8xf32> to vector<8x1xf32>
    %139 = vector.shape_cast %138 : vector<8x1xf32> to vector<8x1xf32>
    %140 = vector.broadcast %139 : vector<8x1xf32> to vector<8x128xf32>
    %141 = arith.select %134, %140, %129 : vector<8x128xi1>, vector<8x128xf32>
    %c24_i32_43 = arith.constant 24 : i32
    %142 = vector.broadcast %c24_i32_43 : i32 to vector<8x128xi32>
    %143 = arith.cmpi sge, %13, %142 : vector<8x128xi32>
    %c30_i32_44 = arith.constant 30 : i32
    %144 = vector.broadcast %c30_i32_44 : i32 to vector<8x128xi32>
    %145 = arith.cmpi slt, %13, %144 : vector<8x128xi32>
    %146 = arith.andi %143, %145 : vector<8x128xi1>
    %cst_45 = arith.constant 0.000000e+00 : f32
    %147 = vector.broadcast %cst_45 : f32 to vector<8x128xf32>
    %148 = arith.select %146, %92, %147 : vector<8x128xi1>, vector<8x128xf32>
    %cst_46 = arith.constant dense<0.000000e+00> : vector<8xf32>
    %149 = vector.multi_reduction <add>, %148, %cst_46 [1] : vector<8x128xf32> to vector<8xf32>
    %150 = vector.shape_cast %149 : vector<8xf32> to vector<8x1xf32>
    %151 = vector.shape_cast %150 : vector<8x1xf32> to vector<8x1xf32>
    %152 = vector.broadcast %151 : vector<8x1xf32> to vector<8x128xf32>
    %153 = arith.select %146, %152, %141 : vector<8x128xi1>, vector<8x128xf32>
    %c30_i32_47 = arith.constant 30 : i32
    %154 = vector.broadcast %c30_i32_47 : i32 to vector<8x128xi32>
    %155 = arith.cmpi sge, %13, %154 : vector<8x128xi32>
    %c36_i32_48 = arith.constant 36 : i32
    %156 = vector.broadcast %c36_i32_48 : i32 to vector<8x128xi32>
    %157 = arith.cmpi slt, %13, %156 : vector<8x128xi32>
    %158 = arith.andi %155, %157 : vector<8x128xi1>
    %cst_49 = arith.constant 0.000000e+00 : f32
    %159 = vector.broadcast %cst_49 : f32 to vector<8x128xf32>
    %160 = arith.select %158, %92, %159 : vector<8x128xi1>, vector<8x128xf32>
    %cst_50 = arith.constant dense<0.000000e+00> : vector<8xf32>
    %161 = vector.multi_reduction <add>, %160, %cst_50 [1] : vector<8x128xf32> to vector<8xf32>
    %162 = vector.shape_cast %161 : vector<8xf32> to vector<8x1xf32>
    %163 = vector.shape_cast %162 : vector<8x1xf32> to vector<8x1xf32>
    %164 = vector.broadcast %163 : vector<8x1xf32> to vector<8x128xf32>
    %165 = arith.select %158, %164, %153 : vector<8x128xi1>, vector<8x128xf32>
    %cst_51 = arith.constant 1.000000e+00 : f32
    %166 = vector.broadcast %cst_51 : f32 to vector<8x128xf32>
    %167 = arith.select %15, %165, %166 : vector<8x128xi1>, vector<8x128xf32>
    %168 = tpu.reciprocal %167 {approx = true} : vector<8x128xf32> -> vector<8x128xf32>
    %169 = arith.mulf %92, %168 : vector<8x128xf32>
    %170 = arith.truncf %169 : vector<8x128xf32> to vector<8x128xbf16>
    %c0_52 = arith.constant 0 : index
    %c0_53 = arith.constant 0 : index
    %171 = vector.load %arg4[%c0_52, %c0_53] : memref<128x384xbf16, #tpu.memory_space<vmem>>, vector<128x384xbf16>
    %cst_54 = arith.constant dense<0.000000e+00> : vector<8x384xf32>
    %172 = tpu.matmul %170, %171, %cst_54 {dimension_numbers = #tpu.dot_dimension_numbers<[1], [0], [0], [1], [0, 0, 1, 1], [], []>} : vector<8x128xbf16>, vector<128x384xbf16>, vector<8x384xf32> -> vector<8x384xf32>
    %c0_55 = arith.constant 0 : index
    %c0_56 = arith.constant 0 : index
    %173 = vector.load %arg5[%c0_55, %c0_56] : memref<1x384xf32, #tpu.memory_space<vmem>>, vector<1x384xf32>
    %174 = vector.broadcast %173 : vector<1x384xf32> to vector<8x384xf32>
    %175 = arith.addf %172, %174 : vector<8x384xf32>
    %cst_57 = arith.constant 0.000000e+00 : f32
    %176 = vector.broadcast %cst_57 : f32 to vector<8x384xf32>
    %177 = arith.maximumf %175, %176 : vector<8x384xf32>
    %178 = arith.truncf %177 : vector<8x384xf32> to vector<8x384xbf16>
    %c0_58 = arith.constant 0 : index
    %c0_59 = arith.constant 0 : index
    %179 = vector.load %arg6[%c0_58, %c0_59] : memref<384x256xbf16, #tpu.memory_space<vmem>>, vector<384x256xbf16>
    %cst_60 = arith.constant dense<0.000000e+00> : vector<8x256xf32>
    %180 = tpu.matmul %178, %179, %cst_60 {dimension_numbers = #tpu.dot_dimension_numbers<[1], [0], [0], [1], [0, 0, 1, 1], [], []>} : vector<8x384xbf16>, vector<384x256xbf16>, vector<8x256xf32> -> vector<8x256xf32>
    %c0_61 = arith.constant 0 : index
    %c0_62 = arith.constant 0 : index
    %181 = vector.load %arg7[%c0_61, %c0_62] : memref<1x256xf32, #tpu.memory_space<vmem>>, vector<1x256xf32>
    %182 = vector.broadcast %181 : vector<1x256xf32> to vector<8x256xf32>
    %183 = arith.addf %180, %182 : vector<8x256xf32>
    %c0_63 = arith.constant 0 : index
    %c0_64 = arith.constant 0 : index
    %184 = vector.load %arg8[%c0_63, %c0_64] : memref<8x256xf32, #tpu.memory_space<vmem>>, vector<8x256xf32>
    tpu.vector_store %arg8[%c0_63, %c0_64], %183 {strides = array<i32>} : memref<8x256xf32, #tpu.memory_space<vmem>>, vector<8x256xf32>,
    return
  }
  func.func @transform_0(%arg0: i32, %arg1: i32) -> (i32, i32) {
    %c0_i32 = arith.constant 0 : i32
    %c0_i32_0 = arith.constant 0 : i32
    return %arg1, %c0_i32 : i32, i32
  }
  func.func @transform_1(%arg0: i32, %arg1: i32) -> (i32, i32) {
    %c1_i32 = arith.constant 1 : i32
    %0 = arith.muli %arg0, %c1_i32 : i32
    %1 = arith.addi %0, %arg1 : i32
    %c0_i32 = arith.constant 0 : i32
    %c0_i32_0 = arith.constant 0 : i32
    return %1, %c0_i32 : i32, i32
  }
  func.func @transform_2(%arg0: i32, %arg1: i32) -> (i32, i32) {
    %c0_i32 = arith.constant 0 : i32
    %c0_i32_0 = arith.constant 0 : i32
    %c0_i32_1 = arith.constant 0 : i32
    return %c0_i32, %c0_i32_0 : i32, i32
  }
  func.func @transform_3(%arg0: i32, %arg1: i32) -> (i32, i32) {
    %c0_i32 = arith.constant 0 : i32
    %c0_i32_0 = arith.constant 0 : i32
    %c0_i32_1 = arith.constant 0 : i32
    return %c0_i32, %c0_i32_0 : i32, i32
  }
  func.func @transform_4(%arg0: i32, %arg1: i32) -> (i32, i32) {
    %c0_i32 = arith.constant 0 : i32
    %c0_i32_0 = arith.constant 0 : i32
    %c0_i32_1 = arith.constant 0 : i32
    return %c0_i32, %c0_i32_0 : i32, i32
  }
  func.func @transform_5(%arg0: i32, %arg1: i32) -> (i32, i32) {
    %c0_i32 = arith.constant 0 : i32
    %c0_i32_0 = arith.constant 0 : i32
    %c0_i32_1 = arith.constant 0 : i32
    return %c0_i32, %c0_i32_0 : i32, i32
  }
  func.func @transform_6(%arg0: i32, %arg1: i32) -> (i32, i32) {
    %c1_i32 = arith.constant 1 : i32
    %0 = arith.muli %arg0, %c1_i32 : i32
    %1 = arith.addi %0, %arg1 : i32
    %c0_i32 = arith.constant 0 : i32
    %c0_i32_0 = arith.constant 0 : i32
    return %1, %c0_i32 : i32, i32
  }
}

</mosaic_0001>

<bundles_post_ra>
// kernel: vae_forward.3
= control target key start
LH: loop header
LB: loop body
LE: loop exit
PB: predicated region body
PF: predicated region fallthrough
CT: control target
= control target key end

     0   :  { %11 = vsyncpa [#allocation3], 0  ;;  %s1981_s0 = inlined_call_operand.vmem [shape: f32[8,128], index: 0, kind: input, shape index: {}]   ;;  %s1982_s1 = inlined_call_operand.vmem [shape: f32[32,128], index: 1, kind: input, shape index: {}]   ;;  %s1983_s2 = inlined_call_operand.vmem [shape: bf16[128,384], index: 2, kind: input, shape index: {}]   ;;  %s1984_s3 = inlined_call_operand.vmem [shape: f32[1,384], index: 3, kind: input, shape index: {}]   ;;  %s1985_s4 = inlined_call_operand.vmem [shape: bf16[384,256], index: 4, kind: input, shape index: {}]   ;;  %s1986_s5 = inlined_call_operand.vmem [shape: f32[1,256], index: 5, kind: input, shape index: {}]   ;;  %s1987_s6 = inlined_call_operand.hbm [shape: f32[32,256], index: 6, kind: output, shape index: {}]  }
   0x1   :  { %13 = vsyncpa [#allocation3 + $0x1], 0  ;;  %s1530_s21 = smov 0   ;;  %s1532_s22 = smov 0  }
   0x2   :  { %s1534_s23 = smov 0   ;;  %s1536_s24 = smov 0  }
   0x3   :  { %s1538_s25 = smov 0   ;;  %s1540_s26 = smov 0  }
   0x4 LB: > { %s1120_s27 = sadd.s32 4294967295, %s1489_s26   ;;  %s1121_s28 = sadd.s32 4294967294, %s1489_s26   ;;  %s1489_s26 = sphi %s1540_s26, %s19_s26   ;;  %s1485_s25 = sphi %s1538_s25, %s2004_s25   ;;  %s1481_s24 = sphi %s1536_s24, %s2003_s24   ;;  %s1477_s23 = sphi %s1534_s23, %s2002_s23   ;;  %s1473_s22 = sphi %s1532_s22, %s2001_s22   ;;  %s1469_s21 = sphi %s1530_s21, %s2000_s21  }
   0x5   : > { %s31_s29 = sadd.s32 1, %s1485_s25  ;;  %s178_s30 = sadd.s32 1, %s1477_s23 }
   0x6   : > { %p33_p0 = scmp.ge.s32.totalorder %s31_s29, 4  ;;  %p188_p1 = scmp.ne.s32.totalorder %s1477_s23, %s1473_s22 }
   0x7   : > { %p189_p2 = scmp.eq.s32.totalorder %s1120_s27, 3  ;;  %p194_p3 = scmp.ne.s32.totalorder %s1473_s22, %s1469_s21 }
   0x8   : > { %s2006_s29 = smov (%p33_p0, %s31_s29), 0  ;;  %p195_p5 = scmp.eq.s32.totalorder %s1121_s28, 3 }
   0x9   : > { %p1570_p4 = por %p189_p2, %p188_p1  ;;  %s175_s8 = ssub.s32 %s1485_s25, %s2006_s29 }
   0xa   : > { %p1125_p6 = scmp.ge.s32.totalorder %s1489_s26, 1  ;;  %p176_p7 = scmp.eq.s32.totalorder %s175_s8, 0 }
   0xb   : > { %p1577_p8 = por %p195_p5, %p194_p3  ;;  %p241_p9 = scmp.lt.s32.totalorder %s1489_s26, 5 }
   0xc   : > { %s1583_s10 = scalar_select %p176_p7, %s1477_s23, %s178_s30  }
   0xd   : > { %p242_p10 = pnand %p1125_p6, %p241_p9 }
   0xe   : > { %p280_p11 = scmp.lt.s32.totalorder (!%p242_p10), %s1481_s24, 3  ;;  %v297_v5 = vlaneseq (!%p242_p10)  ;;  %v295_v9 = vld [vmem:[%s1981_s0] sm:$0xff] (!%p242_p10)  ;;  %v1302_v25 = vld [vmem:[%s1983_s2 + $0x1c] ss:$12 sps:$4 sm:$0xff] (!%p242_p10)   ;;  %v1308_v51 = vld [vmem:[%s1983_s2 + $0x4c] ss:$12 sps:$4 sm:$0xff] (!%p242_p10)  }
   0xf   : > { %245 = sbr.rel (%p242_p10) target bundleno = 880 (0x370), region = 44  ;;  %v1299_v23 = vld [vmem:[%s1983_s2 + $0x4] ss:$12 sps:$4 sm:$0xff] (!%p242_p10)   ;;  %v1301_v24 = vld [vmem:[%s1983_s2] ss:$12 sps:$4 sm:$0xff] (!%p242_p10)   ;;  %v1491_v58 = vmov (!%p242_p10), 0  }
  0x10   : > { %v1591_v6 = vand.u32 (!%p242_p10), 127, %v297_v5  ;;  %550 = vmatprep.subr.bf16.mxu1 (!%p242_p10), %v1299_v23  ;;  %v1304_v26 = vld [vmem:[%s1983_s2 + $0x18] ss:$12 sps:$4 sm:$0xff] (!%p242_p10)   ;;  %v1305_v49 = vld [vmem:[%s1983_s2 + $0x34] ss:$12 sps:$4 sm:$0xff] (!%p242_p10)   ;;  %582 = vmatprep.mubr.bf16.mxu1 (!%p242_p10), %v1491_v58  ;;  %v1492_v62 = vmov (!%p242_p10), 0.0  }
  0x11   : > { %551 = vmatpush1.bf16.msra.mxu1 (!%p242_p10), %v1301_v24  ;;  %v1307_v50 = vld [vmem:[%s1983_s2 + $0x30] ss:$12 sps:$4 sm:$0xff] (!%p242_p10)   ;;  %v1310_v52 = vld [vmem:[%s1983_s2 + $0x48] ss:$12 sps:$4 sm:$0xff] (!%p242_p10)   ;;  %v1313_v54 = vld [vmem:[%s1983_s2 + $0x60] ss:$12 sps:$4 sm:$0xff] (!%p242_p10)  }
  0x12   : > { %vm314_vm0 = vcmp.ge.s32.totalorder (!%p242_p10), %v1591_v6, 12  ;;  %vm315_vm1 = vcmp.lt.s32.totalorder (!%p242_p10), %v1591_v6, 18  ;;  %vm307_vm2 = vcmp.ge.s32.totalorder (!%p242_p10), %v1591_v6, 6  ;;  %vm308_vm3 = vcmp.lt.s32.totalorder (!%p242_p10), %v1591_v6, 12  ;;  %552 = vmatprep.subr.bf16.mxu1 (!%p242_p10), %v1302_v25  ;;  %v1311_v53 = vld [vmem:[%s1983_s2 + $0x64] ss:$12 sps:$4 sm:$0xff] (!%p242_p10)  }
  0x13   : > { %vm321_vm4 = vcmp.ge.s32.totalorder (!%p242_p10), %v1591_v6, 18  ;;  %vm322_vm5 = vcmp.lt.s32.totalorder (!%p242_p10), %v1591_v6, 24  ;;  %vm301_vm6 = vcmp.lt.s32.totalorder (!%p242_p10), %v1591_v6, 6  ;;  %vm1603_vm7 = vmand (!%p242_p10), %vm314_vm0, %vm315_vm1  ;;  %vm328_vm10 = vcmp.ge.s32.totalorder (!%p242_p10), %v1591_v6, 24  ;;  %v1314_v55 = vld [vmem:[%s1983_s2 + $0x7c] ss:$12 sps:$4 sm:$0xff] (!%p242_p10)  }
  0x14   : > { %vm1607_vm8 = vmand (!%p242_p10), %vm307_vm2, %vm308_vm3  ;;  %vm329_vm11 = vcmp.lt.s32.totalorder (!%p242_p10), %v1591_v6, 30  ;;  %vm299_vm12 = vcmp.lt.s32.totalorder (!%p242_p10), %v1591_v6, 36  ;;  %vm335_vm13 = vcmp.ge.s32.totalorder (!%p242_p10), %v1591_v6, 30  ;;  %v1316_v56 = vld [vmem:[%s1983_s2 + $0x78] ss:$12 sps:$4 sm:$0xff] (!%p242_p10)   ;;  %vm1493_vm0 = vmmov (!%p242_p10), 0  }
  0x15   : > { %vm1611_vm9 = vmand (!%p242_p10), %vm321_vm4, %vm322_vm5  ;;  %553 = vmatpush1.bf16.msra.mxu1 (!%p242_p10), %v1304_v26  ;;  %v1317_v57 = vld [vmem:[%s1983_s2 + $0x94] ss:$12 sps:$4 sm:$0xff] (!%p242_p10)   ;;  %v1319_v59 = vld [vmem:[%s1983_s2 + $0x90] ss:$12 sps:$4 sm:$0xff] (!%p242_p10)   ;;  %s272_s8 = sand.u32 (!%p242_p10), 1, %s1473_s22   ;;  %s1205_s14 = sshll.u32 (!%p242_p10), %s1481_s24, 8 }
  0x16   : > { %s281_s11 = scalar_select %p280_p11, %s1481_s24, 3  ;;  %vm1627_vm14 = vmand %vm328_vm10, %vm329_vm11  ;;  %554 = vmatprep.subr.bf16.mxu1 %v1305_v49  ;;  %v1320_v60 = vld [vmem:[%s1983_s2 + $0xac] ss:$12 sps:$4 sm:$0xff]   ;;  %v1322_v61 = vld [vmem:[%s1983_s2 + $0xa8] ss:$12 sps:$4 sm:$0xff]  }
  0x17   : > { %vm1633_vm15 = vmand %vm335_vm13, %vm299_vm12  ;;  %v1331_v63 = vld [vmem:[%s1985_s4 + $0x4] ss:$8 sps:$4 sm:$0xff]   ;;  %v1357_v23 = vld [vmem:[%s1985_s4 + $0x80] ss:$8 sps:$4 sm:$0xff]   ;;  %s1934_s19 = scalar_lea.hbm %s1987_s6, %s1205_s14  ;;  %s1022_s24 = scalar_lea.sflag [#allocation3], %s272_s8 }
  0x18   : > { %s1127_s12 = sshll.u32 %s281_s11, 3  ;;  %937 = vmatprep.subr.bf16.mxu0 %v1331_v63  ;;  %v1358_v24 = vld [vmem:[%s1985_s4 + $0x94] ss:$8 sps:$4 sm:$0xff]   ;;  %v1360_v25 = vld [vmem:[%s1985_s4 + $0x90] ss:$8 sps:$4 sm:$0xff]   ;;  %s1126_s11 = sshll.u32 %s272_s8, 4 }
  0x19   : > { %s283_s15 = scalar_lea.vmem %s1982_s1, %s1127_s12  ;;  %555 = vmatpush1.bf16.msra.mxu1 %v1307_v50  ;;  %v1361_v26 = vld [vmem:[%s1985_s4 + $0xa4] ss:$8 sps:$4 sm:$0xff]   ;;  %v1323_v11 = vld [vmem:[%s1983_s2 + $0x8] ss:$12 sps:$4 sm:$0xff]   ;;  %v1326_v20 = vld [vmem:[%s1983_s2 + $0x50] ss:$12 sps:$4 sm:$0xff]  }
  0x1a   : > { %v287_v0 = vld [vmem:[%s283_s15] sm:$0xff]  ;;  %556 = vmatprep.subr.bf16.mxu1 %v1308_v51  ;;  %v1330_v51 = vld [vmem:[%s1983_s2 + $0xb0] ss:$12 sps:$4 sm:$0xff]   ;;  %s274_s15 = scalar_lea.vmem [#allocation2], %s1126_s11  ;;  %s1494_s27 = smov [#allocation2]  }
  0x1b   : > { %v288_v1 = vadd.f32 1e-20, %v287_v0  ;;  %v1333_v0 = vld [vmem:[%s1985_s4] ss:$8 sps:$4 sm:$0xff]   ;;  %v1325_v6 = vld [vmem:[%s1983_s2 + $0x38] ss:$12 sps:$4 sm:$0xff]  }
  0x1c   : > { %938 = vmatpush1.bf16.msra.mxu0 %v1333_v0  ;;  %v1324_v19 = vld [vmem:[%s1983_s2 + $0x20] ss:$12 sps:$4 sm:$0xff]   ;;  %v1329_v50 = vld [vmem:[%s1983_s2 + $0x98] ss:$12 sps:$4 sm:$0xff]   ;;  %s1037_s16 = sshll.u32 %s274_s15, 4  ;;  %s1415_s28 = sshll.u32 %s1494_s27, 4  ;;  %s1936_s16 = int_to_ptr.vmem [resolvable:$true] %s1037_s16  ;;  %s1416_s28 = int_to_ptr.vmem [resolvable:$false] %s1415_s28 }
  0x1d   : > { %1403 = vlog2.f32 %v288_v1  ;;  %557 = vmatpush1.bf16.msra.mxu1 %v1310_v52  ;;  %v1334_v1 = vld [vmem:[%s1985_s4 + $0x14] ss:$8 sps:$4 sm:$0xff]   ;;  %v1328_v49 = vld [vmem:[%s1983_s2 + $0x80] ss:$12 sps:$4 sm:$0xff]   ;;  %s1411_s20 = scalar_lea.vmem %s1936_s16, 256  ;;  %s1417_s30 = scalar_lea.vmem %s1416_s28, 512 }
  0x1e   : > { %558 = vmatprep.subr.bf16.mxu1 %v1311_v53  ;;  %939 = vmatprep.subr.bf16.mxu0 %v1334_v1  ;;  %v1373_v52 = vld [vmem:[%s1985_s4 + $0xe4] ss:$8 sps:$4 sm:$0xff]   ;;  %v1375_v53 = vld [vmem:[%s1985_s4 + $0xe0] ss:$8 sps:$4 sm:$0xff]   ;;  %p1412_p12 = scmp.ne.s32.totalorder %s1936_s16, %s1411_s20  ;;  %p1418_p1 = scmp.lt.s32.totalorder %s1936_s16, %s1416_s28 }
  0x1f   : > { %p1419_p2 = scmp.lt.s32.totalorder %s1417_s30, %s1411_s20 }
  0x20   : > { %p1413_p13 = pnand %p1412_p12, %p1570_p4 }
  0x21   : > { %559 = vmatpush1.bf16.msra.mxu1 %v1313_v54  ;;  %v1376_v54 = vld [vmem:[%s1985_s4 + $0xf4] ss:$8 sps:$4 sm:$0xff]   ;;  %p1420_p3 = por %p1419_p2, %p1418_p1 }
  0x22   : > { %560 = vmatprep.subr.bf16.mxu1 %v1314_v55  ;;  %v1378_v55 = vld [vmem:[%s1985_s4 + $0xf0] ss:$8 sps:$4 sm:$0xff]   ;;  %p1414_p0 = pneg %p1413_p13 }
  0x24   : > { %p1421_p5 = pnand %p1420_p3, %p1414_p0 }
  0x25   : > { %561 = vmatpush1.bf16.msra.mxu1 %v1316_v56  ;;  %v1381_v56 = vld [vmem:[%s1985_s4 + $0x104] ss:$8 sps:$4 sm:$0xff]  }
  0x26   : > { %562 = vmatprep.subr.bf16.mxu1 %v1317_v57  ;;  %v1872_v57 = vshrl.u32 %v297_v5, 7 }
  0x27   : > { %v1404_v2 = vpop.eup %1403 }
  0x28   : > { %v290_v3 = vmul.f32 0.6931472, %v1404_v2  ;;  %v1336_v2 = vld [vmem:[%s1985_s4 + $0x10] ss:$8 sps:$4 sm:$0xff]  }
  0x29   : > { %563 = vmatpush1.bf16.msra.mxu1 %v1319_v59  ;;  %940 = vmatpush1.bf16.msra.mxu0 %v1336_v2  ;;  %v409_v59 = vsub.s32 0, %v1872_v57 }
  0x2a   : > { %v291_v4 = vsub.f32 1e-20, %v290_v3  ;;  %564 = vmatprep.subr.bf16.mxu1 %v1320_v60  ;;  %v1337_v3 = vld [vmem:[%s1985_s4 + $0x24] ss:$8 sps:$4 sm:$0xff]   ;;  %v405_v60 = vld [vmem:[%s1984_s3] sm:$0x7] }
  0x2b   : > { %941 = vmatprep.subr.bf16.mxu0 %v1337_v3 }
  0x2c   : > { %1405 = vlog2.f32 %v291_v4  ;;  %v1339_v4 = vld [vmem:[%s1985_s4 + $0x20] ss:$8 sps:$4 sm:$0xff]  }
  0x2d   : > { %565 = vmatpush1.bf16.msra.mxu1 %v1322_v61  ;;  %942 = vmatpush1.bf16.msra.mxu0 %v1339_v4  ;;  %v413_v61 = vsub.s32 1, %v1872_v57 }
  0x2e   : > { %1215 = vmatprep.subr.bf16.mxu1 %v1492_v62 }
  0x2f   : > { %v414_v63 = vrot.slane %v405_v60, %v413_v61 }
  0x36   : > { %v1406_v7 = vpop.eup %1405 }
  0x37   : > { %v293_v8 = vmul.f32 0.6931472, %v1406_v7  ;;  %v1340_v7 = vld [vmem:[%s1985_s4 + $0x34] ss:$8 sps:$4 sm:$0xff]  }
  0x38   : > { %943 = vmatprep.subr.bf16.mxu0 %v1340_v7 }
  0x39   : > { %v294_v10 = vsub.f32 0.0, %v293_v8  ;;  %v1342_v8 = vld [vmem:[%s1985_s4 + $0x30] ss:$8 sps:$4 sm:$0xff]  }
  0x3a   : > { %944 = vmatpush1.bf16.msra.mxu0 %v1342_v8 }
  0x3b   : > { %v296_v12 = vadd.f32 %v295_v9, %v294_v10  ;;  %v1343_v9 = vld [vmem:[%s1985_s4 + $0x44] ss:$8 sps:$4 sm:$0xff]   ;;  %v1345_v10 = vld [vmem:[%s1985_s4 + $0x40] ss:$8 sps:$4 sm:$0xff]  }
  0x3c   : > { %945 = vmatprep.subr.bf16.mxu0 %v1343_v9 }
  0x3d   : > { %v303_v15 = vsel %vm301_vm6, %v296_v12, -1e+30  ;;  %v317_v16 = vsel %vm1603_vm7, %v296_v12, -1e+30  ;;  %v310_v17 = vsel %vm1607_vm8, %v296_v12, -1e+30 }
  0x3e   : > { %304 = vmax.xlane.f32.xlu0 %v303_v15  ;;  %318 = vmax.xlane.f32.xlu1 %v317_v16  ;;  %v324_v18 = vsel %vm1611_vm9, %v296_v12, -1e+30  ;;  %v331_v21 = vsel %vm1627_vm14, %v296_v12, -1e+30  ;;  %v337_v22 = vsel %vm1633_vm15, %v296_v12, -1e+30 }
  0x3f   : > { %946 = vmatpush1.bf16.msra.mxu0 %v1345_v10  ;;  %v1348_v15 = vld [vmem:[%s1985_s4 + $0x50] ss:$8 sps:$4 sm:$0xff]   ;;  %v1349_v16 = vld [vmem:[%s1985_s4 + $0x64] ss:$8 sps:$4 sm:$0xff]   ;;  %v1379_v10 = vld [vmem:[%s1985_s4 + $0x100] ss:$8 sps:$4 sm:$0xff]  }
  0x42   : > { %311 = vmax.xlane.f32.xlu0 %v310_v17  ;;  %325 = vmax.xlane.f32.xlu1 %v324_v18  ;;  %v1351_v17 = vld [vmem:[%s1985_s4 + $0x60] ss:$8 sps:$4 sm:$0xff]   ;;  %v1352_v18 = vld [vmem:[%s1985_s4 + $0x74] ss:$8 sps:$4 sm:$0xff]  }
  0x46   : > { %332 = vmax.xlane.f32.xlu0 %v331_v21  ;;  %338 = vmax.xlane.f32.xlu1 %v337_v22  ;;  %v1354_v21 = vld [vmem:[%s1985_s4 + $0x70] ss:$8 sps:$4 sm:$0xff]   ;;  %v1355_v22 = vld [vmem:[%s1985_s4 + $0x84] ss:$8 sps:$4 sm:$0xff]  }
  0xcb   : > { %v305_v27 = vpop.xlane.xlu0 %304  ;;  %v319_v28 = vpop.xlane.xlu1 %318 }
  0xcc   : > { %v306_v29 = vsel %vm301_vm6, %v305_v27, 0.0  ;;  %v1363_v27 = vld [vmem:[%s1985_s4 + $0xa0] ss:$8 sps:$4 sm:$0xff]  }
  0xcf   : > { %v312_v30 = vpop.xlane.xlu0 %311  ;;  %v326_v31 = vpop.xlane.xlu1 %325 }
  0xd0   : > { %v313_v32 = vsel %vm1607_vm8, %v312_v30, %v306_v29  ;;  %v1366_v29 = vld [vmem:[%s1985_s4 + $0xb0] ss:$8 sps:$4 sm:$0xff]   ;;  %v1367_v30 = vld [vmem:[%s1985_s4 + $0xc4] ss:$8 sps:$4 sm:$0xff]  }
  0xd1   : > { %v320_v33 = vsel %vm1603_vm7, %v319_v28, %v313_v32  ;;  %v1364_v28 = vld [vmem:[%s1985_s4 + $0xb4] ss:$8 sps:$4 sm:$0xff]  }
  0xd2   : > { %v327_v34 = vsel %vm1611_vm9, %v326_v31, %v320_v33  ;;  %v1369_v31 = vld [vmem:[%s1985_s4 + $0xc0] ss:$8 sps:$4 sm:$0xff]   ;;  %v1370_v32 = vld [vmem:[%s1985_s4 + $0xd4] ss:$8 sps:$4 sm:$0xff]   ;;  %v1372_v33 = vld [vmem:[%s1985_s4 + $0xd0] ss:$8 sps:$4 sm:$0xff]  }
  0xd3   : > { %v333_v35 = vpop.xlane.xlu0 %332  ;;  %v339_v36 = vpop.xlane.xlu1 %338 }
  0xd4   : > { %v334_v37 = vsel %vm1627_vm14, %v333_v35, %v327_v34 }
  0xd5   : > { %v340_v38 = vsel %vm1633_vm15, %v339_v36, %v334_v37 }
  0xd6   : > { %v341_v39 = vsub.f32 %v296_v12, %v340_v38  ;;  %v1346_v12 = vld [vmem:[%s1985_s4 + $0x54] ss:$8 sps:$4 sm:$0xff]  }
  0xd7   : > { %947 = vmatprep.subr.bf16.mxu0 %v1346_v12 }
  0xd8   : > { %v342_v40 = vsel %vm299_vm12, %v341_v39, -1e+30  ;;  %948 = vmatpush1.bf16.msra.mxu0 %v1348_v15  ;;  %v1384_v15 = vld [vmem:[%s1985_s4 + $0x114] ss:$8 sps:$4 sm:$0xff]  }
  0xd9   : > { %v343_v41 = vmul.f32 1.442695, %v342_v40  ;;  %949 = vmatprep.subr.bf16.mxu0 %v1349_v16  ;;  %v1382_v16 = vld [vmem:[%s1985_s4 + $0x110] ss:$8 sps:$4 sm:$0xff]  }
  0xdb   : > { %1407 = vpow2.f32 %v343_v41 }
  0xdc   : > { %950 = vmatpush1.bf16.msra.mxu0 %v1351_v17  ;;  %v1387_v17 = vld [vmem:[%s1985_s4 + $0x124] ss:$8 sps:$4 sm:$0xff]  }
  0xdd   : > { %951 = vmatprep.subr.bf16.mxu0 %v1352_v18  ;;  %v1385_v18 = vld [vmem:[%s1985_s4 + $0x120] ss:$8 sps:$4 sm:$0xff]  }
  0xe0   : > { %952 = vmatpush1.bf16.msra.mxu0 %v1354_v21  ;;  %v1390_v21 = vld [vmem:[%s1985_s4 + $0x134] ss:$8 sps:$4 sm:$0xff]  }
  0xe1   : > { %953 = vmatprep.subr.bf16.mxu0 %v1355_v22  ;;  %v1393_v22 = vld [vmem:[%s1985_s4 + $0x144] ss:$8 sps:$4 sm:$0xff]  }
  0xe4   : > { %954 = vmatpush1.bf16.msra.mxu0 %v1357_v23  ;;  %v1391_v23 = vld [vmem:[%s1985_s4 + $0x140] ss:$8 sps:$4 sm:$0xff]  }
  0xe5   : > { %v1667_v42 = vpop.eup %1407  ;;  %955 = vmatprep.subr.bf16.mxu0 %v1358_v24  ;;  %v1396_v24 = vld [vmem:[%s1985_s4 + $0x154] ss:$8 sps:$4 sm:$0xff]  }
  0xe6   : > { %v349_v43 = vsel %vm1607_vm8, %v1667_v42, 0.0  ;;  %v345_v44 = vsel %vm301_vm6, %v1667_v42, 0.0  ;;  %v357_v45 = vsel %vm1611_vm9, %v1667_v42, 0.0  ;;  %v353_v46 = vsel %vm1603_vm7, %v1667_v42, 0.0 }
  0xe7   : > { %350 = vadd.xlane.f32.xlu1 %v349_v43  ;;  %346 = vadd.xlane.f32.xlu0 %v345_v44  ;;  %v365_v47 = vsel %vm1633_vm15, %v1667_v42, 0.0  ;;  %v361_v48 = vsel %vm1627_vm14, %v1667_v42, 0.0 }
  0xe8   : > { %956 = vmatpush1.bf16.msra.mxu0 %v1360_v25  ;;  %v417_v25 = vsub.s32 2, %v1872_v57 }
  0xe9   : > { %957 = vmatprep.subr.bf16.mxu0 %v1361_v26  ;;  %v1394_v26 = vld [vmem:[%s1985_s4 + $0x150] ss:$8 sps:$4 sm:$0xff]  }
  0xeb   : > { %358 = vadd.xlane.f32.xlu1 %v357_v45  ;;  %354 = vadd.xlane.f32.xlu0 %v353_v46 }
  0xec   : > { %958 = vmatpush1.bf16.msra.mxu0 %v1363_v27  ;;  %v1399_v27 = vld [vmem:[%s1985_s4 + $0x164] ss:$8 sps:$4 sm:$0xff]  }
  0xed   : > { %959 = vmatprep.subr.bf16.mxu0 %v1364_v28  ;;  %v418_v28 = vrot.slane %v405_v60, %v417_v25 }
  0xef   : > { %366 = vadd.xlane.f32.xlu1 %v365_v47  ;;  %362 = vadd.xlane.f32.xlu0 %v361_v48 }
  0xf0   : > { %960 = vmatpush1.bf16.msra.mxu0 %v1366_v29  ;;  %v1397_v29 = vld [vmem:[%s1985_s4 + $0x160] ss:$8 sps:$4 sm:$0xff]  }
  0xf1   : > { %961 = vmatprep.subr.bf16.mxu0 %v1367_v30  ;;  %v1402_v30 = vld [vmem:[%s1985_s4 + $0x174] ss:$8 sps:$4 sm:$0xff]  }
  0xf4   : > { %962 = vmatpush1.bf16.msra.mxu0 %v1369_v31 }
  0xf5   : > { %963 = vmatprep.subr.bf16.mxu0 %v1370_v32 }
  0xf8   : > { %964 = vmatpush1.bf16.msra.mxu0 %v1372_v33 }
  0xf9   : > { %965 = vmatprep.subr.bf16.mxu0 %v1373_v52 }
  0xfc   : > { %966 = vmatpush1.bf16.msra.mxu0 %v1375_v53 }
  0xfd   : > { %967 = vmatprep.subr.bf16.mxu0 %v1376_v54 }
 0x100   : > { %968 = vmatpush1.bf16.msra.mxu0 %v1378_v55 }
 0x101   : > { %978 = vmatprep.subr.bf16.mxu0 %v1381_v56 }
 0x174   : > { %v351_v34 = vpop.xlane.xlu1 %350  ;;  %v347_v35 = vpop.xlane.xlu0 %346 }
 0x175   : > { %v348_v36 = vsel %vm301_vm6, %v347_v35, 0.0  ;;  %v1400_v35 = vld [vmem:[%s1985_s4 + $0x170] ss:$8 sps:$4 sm:$0xff]  }
 0x176   : > { %v352_v37 = vsel %vm1607_vm8, %v351_v34, %v348_v36 }
 0x178   : > { %v359_v38 = vpop.xlane.xlu1 %358  ;;  %v355_v39 = vpop.xlane.xlu0 %354 }
 0x179   : > { %v356_v40 = vsel %vm1603_vm7, %v355_v39, %v352_v37  ;;  %v685_v39 = vld [vmem:[%s1986_s5] sm:$0x3] }
 0x17a   : > { %v360_v43 = vsel %vm1611_vm9, %v359_v38, %v356_v40  ;;  %v690_v40 = vrot.slane %v685_v39, %v409_v59 }
 0x17c   : > { %v367_v41 = vpop.xlane.xlu1 %366  ;;  %v363_v44 = vpop.xlane.xlu0 %362 }
 0x17d   : > { %v364_v45 = vsel %vm1627_vm14, %v363_v44, %v360_v43 }
 0x17e   : > { %v368_v46 = vsel %vm1633_vm15, %v367_v41, %v364_v45  ;;  %v694_v41 = vrot.slane %v685_v39, %v413_v61 }
 0x17f   : > { %v369_v13 = vsel %vm299_vm12, %v368_v46, 1.0 }
 0x180   : > { %1409 = vrcp.f32 %v369_v13 }
 0x18a   : > { %v1410_v47 = vpop.eup %1409 }
 0x18b   : > { %v371_v48 = vmul.f32 %v1410_v47, %v1667_v42  ;;  %v1327_v42 = vld [vmem:[%s1983_s2 + $0x68] ss:$12 sps:$4 sm:$0xff]  }
 0x18d   : > { %v372_v14 = vpack.c.bf16 %v371_v48, %v371_v48 }
 0x18f   : > { %583 = vmatmul.mubr.bf16.vlgmr.msra.gmra.mrb[0].mxu1 %v372_v14 }
 0x190   : > { %1216 = vmatpush3.bf16.msra.mxu1 %v1323_v11  ;;  %1231 = vmatprep.mubr.msk.bf16.mxu1 %vm1493_vm0, %v1492_v62 }
 0x191   : > { %1217 = vmatprep.subr.bf16.mxu1 %v1492_v62 }
 0x194   : > { %1218 = vmatpush3.bf16.msra.mxu1 %v1324_v19 }
 0x195   : > { %1219 = vmatprep.subr.bf16.mxu1 %v1492_v62 }
 0x198   : > { %1220 = vmatpush3.bf16.msra.mxu1 %v1325_v6 }
 0x199   : > { %1221 = vmatprep.subr.bf16.mxu1 %v1492_v62 }
 0x19c   : > { %1222 = vmatpush3.bf16.msra.mxu1 %v1326_v20 }
 0x19d   : > { %1223 = vmatprep.subr.bf16.mxu1 %v1492_v62 }
 0x1a0   : > { %1224 = vmatpush3.bf16.msra.mxu1 %v1327_v42 }
 0x1a1   : > { %1225 = vmatprep.subr.bf16.mxu1 %v1492_v62 }
 0x1a4   : > { %1226 = vmatpush3.bf16.msra.mxu1 %v1328_v49 }
 0x1a5   : > { %1227 = vmatprep.subr.bf16.mxu1 %v1492_v62 }
 0x1a8   : > { %1228 = vmatpush3.bf16.msra.mxu1 %v1329_v50 }
 0x1a9   : > { %1229 = vmatprep.subr.bf16.mxu1 %v1492_v62  ;;  %v410_v62 = vrot.slane %v405_v60, %v409_v59 }
 0x1ac   : > { %1230 = vmatpush3.bf16.msra.mxu1 %v1330_v51 }
 0x1af   : > { %1232 = vmatmul.mubr.bf16.vlgmr.msra.gmra.mrb[4].mxu1 %v372_v14 }
 0x262   : > { %v584_v0 = vpop.f32.mrb[0].mxu1 }
 0x263   : > { %v585_v1 = vadd.f32 %v584_v0, %v410_v62  ;;  %v586_v2 = vpop.f32.mrb[1].mxu1 }
 0x264   : > { %v587_v3 = vadd.f32 %v586_v2, %v414_v63  ;;  %v588_v4 = vpop.f32.mrb[2].mxu1 }
 0x265   : > { %v631_v7 = vmax.f32 %v585_v1, 0.0  ;;  %v589_v8 = vpop.f32.mrb[3].mxu1 }
 0x266   : > { %v632_v9 = vmax.f32 %v587_v3, 0.0 }
 0x267   : > { %v634_v12 = vpack.c.bf16 %v631_v7, %v631_v7 }
 0x268   : > { %v635_v5 = vpack.c.bf16 %v632_v9, %v632_v9 }
 0x26a   : > { %969 = vmatprep.mubr.bf16.mxu0 %v635_v5 }
 0x26b   : > { %970 = vmatmul.mubr.bf16.vlgmr.msra.gmra.mrb[0].mxu0 %v634_v12 }
 0x26c   : > { %979 = vmatpush1.bf16.msra.mxu0 %v1379_v10  ;;  %1010 = vmatprep.mubr.bf16.mxu0 %v1491_v58  ;;  %v1388_v58 = vld [vmem:[%s1985_s4 + $0x130] ss:$8 sps:$4 sm:$0xff]  }
 0x26d   : > { %980 = vmatprep.subr.bf16.mxu0 %v1384_v15 }
 0x270   : > { %981 = vmatpush1.bf16.msra.mxu0 %v1382_v16 }
 0x271   : > { %982 = vmatprep.subr.bf16.mxu0 %v1387_v17 }
 0x274   : > { %983 = vmatpush1.bf16.msra.mxu0 %v1385_v18 }
 0x275   : > { %984 = vmatprep.subr.bf16.mxu0 %v1390_v21 }
 0x278   : > { %985 = vmatpush1.bf16.msra.mxu0 %v1388_v58 }
 0x279   : > { %986 = vmatprep.subr.bf16.mxu0 %v1393_v22 }
 0x27c   : > { %987 = vmatpush1.bf16.msra.mxu0 %v1391_v23 }
 0x27d   : > { %988 = vmatprep.subr.bf16.mxu0 %v1396_v24 }
 0x280   : > { %989 = vmatpush1.bf16.msra.mxu0 %v1394_v26 }
 0x281   : > { %990 = vmatprep.subr.bf16.mxu0 %v1399_v27 }
 0x282   : > { %v625_v31 = vpop.f32.mrb[4].mxu1 }
 0x283   : > { %v626_v32 = vadd.f32 %v625_v31, %v418_v28  ;;  %v1233_v33 = vpop.f32.mrb[5].mxu1 }
 0x284   : > { %v628_v34 = vpop.f32.mrb[6].mxu1  ;;  %991 = vmatpush1.bf16.msra.mxu0 %v1397_v29 }
 0x285   : > { %v633_v36 = vmax.f32 %v626_v32, 0.0  ;;  %v1234_v37 = vpop.f32.mrb[7].mxu1  ;;  %992 = vmatprep.subr.bf16.mxu0 %v1402_v30 }
 0x287   : > { %v636_v38 = vpack.c.bf16 %v633_v36, %v633_v36 }
 0x288   : > { %993 = vmatpush1.bf16.msra.mxu0 %v1400_v35 }
 0x28b   : > { %1011 = vmatmul.mubr.bf16.vlgmr.msra.gmra.mrb[0].mxu0 %v636_v38 }
 0x35e   : > { %v1012_v43 = vpop.f32.mrb[0].mxu0 }
 0x35f   : > { %v1235_v44 = vadd.f32 %v1012_v43, %v690_v40  ;;  %v1014_v45 = vpop.f32.mrb[1].mxu0 }
 0x360   : > { %v1236_v46 = vadd.f32 %v1014_v45, %v694_v41  ;;  %v1016_v13 = vpop.f32.mrb[2].mxu0 }
 0x361   : > { %1019 = vst [vmem:[%s274_s15] sm:$0xff] %v1235_v44  ;;  %v1017_v47 = vpop.f32.mrb[3].mxu0 }
 0x362   : > { %1020 = vst [vmem:[%s274_s15 + $0x8] sm:$0xff] %v1236_v46 }
 0x363   : > { %1424 = shalt.err (!%p1421_p5)
}
 0x364   : > { %s1425_s8 = scalar_lea.hbm %s1934_s19, 256  ;;  %s1429_s13 = scalar_lea.hbm %s1987_s6, 1024 }
 0x365   : > { %p1426_p6 = scmp.ne.s32.totalorder %s1934_s19, %s1425_s8  ;;  %p1430_p10 = scmp.lt.u32.totalorder %s1934_s19, %s1987_s6 }
 0x366   : > { %p1431_p11 = scmp.lt.u32.totalorder %s1429_s13, %s1425_s8  ;;  %p1433_p13 = scmp.lt.u32.totalorder %s1425_s8, %s1934_s19 }
 0x367   : > { %p1427_p7 = pnand %p1426_p6, %p1570_p4 }
 0x368   : > { %p1432_p12 = por %p1431_p11, %p1430_p10 }
 0x369   : > { %p1428_p9 = pneg %p1427_p7 }
 0x36a   : > { %p1434_p0 = por %p1433_p13, %p1432_p12 }
 0x36c   : > { %p1435_p1 = pnand %p1434_p0, %p1428_p9 }
 0x36e   : > { %1438 = shalt.err (!%p1435_p1)
}
 0x36f   : > { %1241 = dma.vmem_to_hbm [thread:$0]  (%p1570_p4), %s1936_s16, 256, %s1934_s19, %s1022_s24  }
 0x370 PF: > { %p1247_p2 = scmp.ge.s32.totalorder %s1489_s26, 2  ;;  %s1049_s17 = sand.u32 1, %s1469_s21  }
 0x371   : > { %s1050_s18 = scalar_lea.sflag [#allocation3], %s1049_s17 }
 0x372   : > { %p1244_p3 = pnand %p1247_p2, %p1577_p8 }
 0x374   : > { %1464 = dma.done.wait (!%p1244_p3), %s1050_s18, 256  }
 0x375   : > { %1466 = vsyncadd (!%p1244_p3), %s1050_s18, 4294967040  ;;  %s19_s26 = sadd.s32 1, %s1489_s26   ;;  %s2000_s21 = smov %s1473_s22 }
 0x376   : > { %p16_p5 = scmp.ge.s32.totalorder %s19_s26, 6   ;;  %s2001_s22 = smov %s1477_s23 }
 0x377   : > { %s2002_s23 = smov %s1583_s10  ;;  %s2003_s24 = smov %s1485_s25 }
 0x378   : > { %s2004_s25 = smov %s2006_s29  ;;  %18 = sbr.rel (!%p16_p5) target bundleno = 4 (0x4), region = 82 }
 0x37f   :  { %1055 = vsyncpa [#allocation3], 1 }
 0x380   :  { %1057 = vsyncpa [#allocation3 + $0x1], 1 }

// kernel: vae_forward.2
= control target key start
LH: loop header
LB: loop body
LE: loop exit
PB: predicated region body
PF: predicated region fallthrough
CT: control target
= control target key end

     0   :  { %10 = vsyncpa [#allocation3], 0  ;;  %s1171_s0 = inlined_call_operand.hbm [shape: f32[8,256], index: 0, kind: input, shape index: {}]   ;;  %s1172_s1 = inlined_call_operand.hbm [shape: bf16[256,384], index: 1, kind: input, shape index: {}]   ;;  %s1173_s2 = inlined_call_operand.vmem [shape: f32[1,384], index: 2, kind: input, shape index: {}]   ;;  %s1174_s3 = inlined_call_operand.hbm [shape: bf16[384,128], index: 3, kind: input, shape index: {}]   ;;  %s1175_s4 = inlined_call_operand.vmem [shape: f32[1,128], index: 4, kind: input, shape index: {}]   ;;  %s1176_s5 = inlined_call_operand.vmem [shape: f32[8,128], index: 5, kind: output, shape index: {}]  }
   0x1   :  { %11 = vsyncpa [#allocation5], 0  ;;  %s1087_s18 = smov [#allocation4]   ;;  %s1017_s22 = scalar_lea.hbm %s1172_s1, 6144 }
   0x2   :  { %s27_s19 = sshll.u32 %s1087_s18, 4  ;;  %p1018_p0 = scmp.ne.s32.totalorder %s1172_s1, %s1017_s22  ;;  %s28_s19 = int_to_ptr.vmem [resolvable:$true] %s27_s19 }
   0x3   :  { %p1021_p1 = scmp.lt.u32.totalorder %s1017_s22, %s1172_s1 }
   0x5   :  { %p1023_p2 = pnand %p1021_p1, %p1018_p0 }
   0x7   :  { %1026 = shalt.err (!%p1023_p2)
}
   0x8   :  { %s1027_s27 = scalar_lea.vmem %s28_s19, 6144  ;;  %p1032_p4 = scmp.lt.s32.totalorder %s28_s19, %s28_s19 }
   0x9   :  { %p1028_p3 = scmp.ne.s32.totalorder %s28_s19, %s1027_s27  ;;  %p1033_p5 = scmp.lt.s32.totalorder %s1027_s27, %s1027_s27 }
   0xb   :  { %p1034_p6 = por %p1033_p5, %p1032_p4 }
   0xd   :  { %p1035_p7 = pnand %p1034_p6, %p1028_p3 }
   0xf   :  { %1038 = shalt.err (!%p1035_p7)
}
  0x10   :  { %s1088_s28 = smov 192   ;;  %s1089_s29 = smov 12  }
  0x11   :  { %33 = dma.hbm_to_vmem [thread:$0]  %s1172_s1, 6144, %s28_s19, [#allocation5], %s1088_s28, %s1088_s28, %s1089_s29  }
  0x12   :  { %s1090_s7 = smov [#allocation2]   ;;  %s1091_s9 = smov [#allocation6]  }
  0x13   :  { %s18_s8 = sshll.u32 %s1090_s7, 4  ;;  %s41_s10 = sshll.u32 %s1091_s9, 4  ;;  %s19_s8 = int_to_ptr.vmem [resolvable:$true] %s18_s8  ;;  %s42_s10 = int_to_ptr.vmem [resolvable:$true] %s41_s10 }
  0x14   :  { %s1039_s13 = scalar_lea.hbm %s1171_s0, 256 }
  0x15   :  { %p1040_p8 = scmp.ne.s32.totalorder %s1171_s0, %s1039_s13  ;;  %p1043_p9 = scmp.lt.u32.totalorder %s1039_s13, %s1171_s0 }
  0x17   :  { %p1045_p10 = pnand %p1043_p9, %p1040_p8 }
  0x19   :  { %1048 = shalt.err (!%p1045_p10)
}
  0x1a   :  { %s1049_s1 = scalar_lea.vmem %s19_s8, 256  ;;  %p1054_p12 = scmp.lt.s32.totalorder %s19_s8, %s19_s8 }
  0x1b   :  { %p1050_p11 = scmp.ne.s32.totalorder %s19_s8, %s1049_s1  ;;  %p1055_p13 = scmp.lt.s32.totalorder %s1049_s1, %s1049_s1 }
  0x1d   :  { %p1056_p0 = por %p1055_p13, %p1054_p12 }
  0x1f   :  { %p1057_p1 = pnand %p1056_p0, %p1050_p11 }
  0x21   :  { %1060 = shalt.err (!%p1057_p1)
}
  0x22   :  { %21 = dma.hbm_to_vmem [thread:$0]  %s1171_s0, 256, %s19_s8, [#allocation3]  }
  0x23   :  { %s1061_s22 = scalar_lea.hbm %s1174_s3, 3072 }
  0x24   :  { %p1062_p2 = scmp.ne.s32.totalorder %s1174_s3, %s1061_s22  ;;  %p1065_p3 = scmp.lt.u32.totalorder %s1061_s22, %s1174_s3 }
  0x26   :  { %p1067_p4 = pnand %p1065_p3, %p1062_p2 }
  0x28   :  { %1070 = shalt.err (!%p1067_p4)
}
  0x29   :  { %s1071_s27 = scalar_lea.vmem %s42_s10, 3072  ;;  %p1076_p6 = scmp.lt.s32.totalorder %s42_s10, %s42_s10 }
  0x2a   :  { %p1072_p5 = scmp.ne.s32.totalorder %s42_s10, %s1071_s27  ;;  %p1077_p7 = scmp.lt.s32.totalorder %s1071_s27, %s1071_s27 }
  0x2c   :  { %p1078_p8 = por %p1077_p7, %p1076_p6 }
  0x2e   :  { %p1079_p9 = pnand %p1078_p8, %p1072_p5 }
  0x30   :  { %1082 = shalt.err (!%p1079_p9)
}
  0x31   :  { %s1092_s0 = smov 64   ;;  %s1093_s28 = smov 4  }
  0x32   :  { %47 = dma.hbm_to_vmem [thread:$0]  %s1174_s3, 3072, %s42_s10, [#allocation5], %s1092_s0, %s1092_s0, %s1093_s28  }
  0x33   :  { %1083 = dma.done.wait [#allocation3], 256  }
  0x34   :  { %1084 = vsyncadd [#allocation3], 4294967040 }
  0x35   :  { %1085 = dma.done.wait [#allocation5], 9216  }
  0x36   :  { %1086 = vsyncadd [#allocation5], 4294958080  ;;  %v929_v0 = vld [vmem:[#allocation4 + $0x4] ss:$12 sps:$4 sm:$0xff]   ;;  %v931_v1 = vld [vmem:[#allocation4] ss:$12 sps:$4 sm:$0xff]  }
  0x37   :  { %401 = vmatprep.subr.bf16.mxu0 %v929_v0  ;;  %v932_v2 = vld [vmem:[#allocation4 + $0x1c] ss:$12 sps:$4 sm:$0xff]   ;;  %v934_v3 = vld [vmem:[#allocation4 + $0x18] ss:$12 sps:$4 sm:$0xff]   ;;  %v935_v4 = vld [vmem:[#allocation4 + $0x34] ss:$12 sps:$4 sm:$0xff]  }
  0x38   :  { %402 = vmatpush1.bf16.msra.mxu0 %v931_v1  ;;  %v937_v5 = vld [vmem:[#allocation4 + $0x30] ss:$12 sps:$4 sm:$0xff]   ;;  %v938_v6 = vld [vmem:[#allocation4 + $0x4c] ss:$12 sps:$4 sm:$0xff]   ;;  %v940_v7 = vld [vmem:[#allocation4 + $0x48] ss:$12 sps:$4 sm:$0xff]  }
  0x39   :  { %403 = vmatprep.subr.bf16.mxu0 %v932_v2  ;;  %v941_v8 = vld [vmem:[#allocation4 + $0x64] ss:$12 sps:$4 sm:$0xff]   ;;  %v955_v9 = vld [vmem:[#allocation4 + $0xc8] ss:$12 sps:$4 sm:$0xff]   ;;  %v943_v11 = vld [vmem:[#allocation4 + $0x60] ss:$12 sps:$4 sm:$0xff]  }
  0x3a   :  { %v957_v10 = vld [vmem:[#allocation4 + $0x8] ss:$12 sps:$4 sm:$0xff]   ;;  %847 = vmatprep.subr.bf16.mxu1 %v955_v9  ;;  %v960_v12 = vld [vmem:[#allocation4 + $0xe0] ss:$12 sps:$4 sm:$0xff]   ;;  %v946_v15 = vld [vmem:[#allocation4 + $0x78] ss:$12 sps:$4 sm:$0xff]  }
  0x3b   :  { %848 = vmatpush3.bf16.msra.mxu1 %v957_v10  ;;  %v944_v13 = vld [vmem:[#allocation4 + $0x7c] ss:$12 sps:$4 sm:$0xff]   ;;  %v962_v14 = vld [vmem:[#allocation4 + $0x20] ss:$12 sps:$4 sm:$0xff]   ;;  %v965_v17 = vld [vmem:[#allocation4 + $0xf8] ss:$12 sps:$4 sm:$0xff]  }
  0x3c   :  { %404 = vmatpush1.bf16.msra.mxu0 %v934_v3  ;;  %849 = vmatprep.subr.bf16.mxu1 %v960_v12  ;;  %v947_v16 = vld [vmem:[#allocation4 + $0x94] ss:$12 sps:$4 sm:$0xff]   ;;  %v967_v18 = vld [vmem:[#allocation4 + $0x38] ss:$12 sps:$4 sm:$0xff]   ;;  %v949_v19 = vld [vmem:[#allocation4 + $0x90] ss:$12 sps:$4 sm:$0xff]  }
  0x3d   :  { %405 = vmatprep.subr.bf16.mxu0 %v935_v4  ;;  %v970_v20 = vld [vmem:[#allocation4 + $0x110] ss:$12 sps:$4 sm:$0xff]   ;;  %v950_v22 = vld [vmem:[#allocation4 + $0xac] ss:$12 sps:$4 sm:$0xff]   ;;  %v975_v23 = vld [vmem:[#allocation4 + $0x128] ss:$12 sps:$4 sm:$0xff]  }
  0x3e   :  { %v972_v21 = vld [vmem:[#allocation4 + $0x50] ss:$12 sps:$4 sm:$0xff]   ;;  %v952_v24 = vld [vmem:[#allocation4 + $0xa8] ss:$12 sps:$4 sm:$0xff]   ;;  %v980_v27 = vld [vmem:[#allocation4 + $0x140] ss:$12 sps:$4 sm:$0xff]  }
  0x3f   :  { %850 = vmatpush3.bf16.msra.mxu1 %v962_v14  ;;  %v977_v25 = vld [vmem:[#allocation4 + $0x68] ss:$12 sps:$4 sm:$0xff]   ;;  %v953_v26 = vld [vmem:[#allocation4 + $0xc4] ss:$12 sps:$4 sm:$0xff]   ;;  %v956_v28 = vld [vmem:[#allocation4 + $0xc0] ss:$12 sps:$4 sm:$0xff]  }
  0x40   :  { %406 = vmatpush1.bf16.msra.mxu0 %v937_v5  ;;  %851 = vmatprep.subr.bf16.mxu1 %v965_v17  ;;  %v982_v29 = vld [vmem:[#allocation4 + $0x80] ss:$12 sps:$4 sm:$0xff]   ;;  %v958_v30 = vld [vmem:[#allocation4 + $0xdc] ss:$12 sps:$4 sm:$0xff]   ;;  %v985_v31 = vld [vmem:[#allocation4 + $0x158] ss:$12 sps:$4 sm:$0xff]  }
  0x41   :  { %407 = vmatprep.subr.bf16.mxu0 %v938_v6  ;;  %v961_v32 = vld [vmem:[#allocation4 + $0xd8] ss:$12 sps:$4 sm:$0xff]   ;;  %v963_v33 = vld [vmem:[#allocation4 + $0xf4] ss:$12 sps:$4 sm:$0xff]   ;;  %v990_v35 = vld [vmem:[#allocation4 + $0x170] ss:$12 sps:$4 sm:$0xff]  }
  0x42   :  { %v987_v34 = vld [vmem:[#allocation4 + $0x98] ss:$12 sps:$4 sm:$0xff]   ;;  %v966_v36 = vld [vmem:[#allocation4 + $0xf0] ss:$12 sps:$4 sm:$0xff]   ;;  %v971_v43 = vld [vmem:[#allocation4 + $0x108] ss:$12 sps:$4 sm:$0xff]  }
  0x43   :  { %852 = vmatpush3.bf16.msra.mxu1 %v967_v18  ;;  %v61_v37 = vld [vmem:[#allocation2 + $0x8] sm:$0xff]  ;;  %v60_v41 = vld [vmem:[#allocation2] sm:$0xff]  ;;  %v993_v42 = vld [vmem:[#allocation6 + $0x40] sm:$0xff]   ;;  %v1094_v1 = vmov 0.0   ;;  %vm1095_vm0 = vmmov 0  }
  0x44   :  { %408 = vmatpush1.bf16.msra.mxu0 %v940_v7  ;;  %853 = vmatprep.subr.bf16.mxu1 %v970_v20  ;;  %v968_v38 = vld [vmem:[#allocation4 + $0x10c] ss:$12 sps:$4 sm:$0xff]   ;;  %v992_v39 = vld [vmem:[#allocation4 + $0xb0] ss:$12 sps:$4 sm:$0xff]   ;;  %v63_v40 = vpack.c.bf16 %v61_v37, %v61_v37  ;;  %v62_v45 = vpack.c.bf16 %v60_v41, %v60_v41  ;;  %v994_v46 = vld [vmem:[#allocation6] sm:$0xff]  }
  0x45   :  { %409 = vmatprep.subr.bf16.mxu0 %v941_v8  ;;  %v973_v44 = vld [vmem:[#allocation4 + $0x124] ss:$12 sps:$4 sm:$0xff]   ;;  %v996_v47 = vld [vmem:[#allocation6 + $0x48] sm:$0xff]   ;;  %v983_v53 = vld [vmem:[#allocation4 + $0x154] ss:$12 sps:$4 sm:$0xff]  }
  0x46   :  { %433 = vmatprep.mubr.bf16.mxu0 %v63_v40  ;;  %474 = vmatprep.mubr.bf16.mxu1 %v63_v40  ;;  %v976_v48 = vld [vmem:[#allocation4 + $0x120] ss:$12 sps:$4 sm:$0xff]   ;;  %v978_v49 = vld [vmem:[#allocation4 + $0x13c] ss:$12 sps:$4 sm:$0xff]   ;;  %v999_v51 = vld [vmem:[#allocation6 + $0x50] sm:$0xff]  }
  0x47   :  { %854 = vmatpush3.bf16.msra.mxu1 %v972_v21  ;;  %v997_v50 = vld [vmem:[#allocation6 + $0x8] sm:$0xff]   ;;  %v981_v52 = vld [vmem:[#allocation4 + $0x138] ss:$12 sps:$4 sm:$0xff]   ;;  %v1000_v54 = vld [vmem:[#allocation6 + $0x10] sm:$0xff]  }
  0x48   :  { %410 = vmatpush1.bf16.msra.mxu0 %v943_v11  ;;  %855 = vmatprep.subr.bf16.mxu1 %v975_v23  ;;  %v1002_v55 = vld [vmem:[#allocation6 + $0x58] sm:$0xff]   ;;  %v1005_v59 = vld [vmem:[#allocation6 + $0x60] sm:$0xff]   ;;  %v991_v60 = vld [vmem:[#allocation4 + $0x168] ss:$12 sps:$4 sm:$0xff]  }
  0x49   :  { %411 = vmatprep.subr.bf16.mxu0 %v944_v13  ;;  %v986_v56 = vld [vmem:[#allocation4 + $0x150] ss:$12 sps:$4 sm:$0xff]   ;;  %v988_v57 = vld [vmem:[#allocation4 + $0x16c] ss:$12 sps:$4 sm:$0xff]   ;;  %v1006_v61 = vld [vmem:[#allocation6 + $0x20] sm:$0xff]   ;;  %v130_v13 = vlaneseq }
  0x4a   :  { %v1003_v58 = vld [vmem:[#allocation6 + $0x18] sm:$0xff]   ;;  %v1008_v62 = vld [vmem:[#allocation6 + $0x68] sm:$0xff]   ;;  %v995_v63 = vld [vmem:[#allocation6 + $0x80] sm:$0xff]  }
  0x4b   :  { %856 = vmatpush3.bf16.msra.mxu1 %v977_v25  ;;  %v1009_v0 = vld [vmem:[#allocation6 + $0x28] sm:$0xff]   ;;  %v1001_v3 = vld [vmem:[#allocation6 + $0x90] sm:$0xff]   ;;  %v1004_v4 = vld [vmem:[#allocation6 + $0x98] sm:$0xff]   ;;  %v131_v14 = vshrl.u32 %v130_v13, 7 }
  0x4c   :  { %412 = vmatpush1.bf16.msra.mxu0 %v946_v15  ;;  %857 = vmatprep.subr.bf16.mxu1 %v980_v27  ;;  %v998_v2 = vld [vmem:[#allocation6 + $0x88] sm:$0xff]   ;;  %v1007_v5 = vld [vmem:[#allocation6 + $0xa0] sm:$0xff]   ;;  %v1011_v7 = vld [vmem:[#allocation6 + $0x70] sm:$0xff]  }
  0x4d   :  { %413 = vmatprep.subr.bf16.mxu0 %v947_v16  ;;  %v1010_v6 = vld [vmem:[#allocation6 + $0xa8] sm:$0xff]   ;;  %v1012_v8 = vld [vmem:[#allocation6 + $0x30] sm:$0xff]   ;;  %v1014_v10 = vld [vmem:[#allocation6 + $0x78] sm:$0xff]   ;;  %v140_v15 = vsub.s32 2, %v131_v14  ;;  %v136_v27 = vsub.s32 1, %v131_v14 }
  0x4e   :  { %v1013_v9 = vld [vmem:[#allocation6 + $0xb0] sm:$0xff]   ;;  %v1015_v11 = vld [vmem:[#allocation6 + $0x38] sm:$0xff]   ;;  %v128_v16 = vld [vmem:[%s1173_s2] sm:$0x7] }
  0x4f   :  { %858 = vmatpush3.bf16.msra.mxu1 %v982_v29  ;;  %v1016_v12 = vld [vmem:[#allocation6 + $0xb8] sm:$0xff]   ;;  %v141_v18 = vrot.slane %v128_v16, %v140_v15  ;;  %v137_v29 = vrot.slane %v128_v16, %v136_v27 }
  0x50   :  { %414 = vmatpush1.bf16.msra.mxu0 %v949_v19  ;;  %859 = vmatprep.subr.bf16.mxu1 %v985_v31 }
  0x51   :  { %415 = vmatprep.subr.bf16.mxu0 %v950_v22 }
  0x53   :  { %860 = vmatpush3.bf16.msra.mxu1 %v987_v34 }
  0x54   :  { %416 = vmatpush1.bf16.msra.mxu0 %v952_v24  ;;  %861 = vmatprep.subr.bf16.mxu1 %v990_v35 }
  0x55   :  { %417 = vmatprep.subr.bf16.mxu0 %v953_v26  ;;  %v132_v26 = vsub.s32 0, %v131_v14 }
  0x57   :  { %862 = vmatpush3.bf16.msra.mxu1 %v992_v39 }
  0x58   :  { %418 = vmatpush1.bf16.msra.mxu0 %v956_v28  ;;  %869 = vmatprep.subr.bf16.mxu1 %v993_v42  ;;  %v133_v28 = vrot.slane %v128_v16, %v132_v26 }
  0x59   :  { %419 = vmatprep.subr.bf16.mxu0 %v958_v30 }
  0x5a   :  { %475 = vmatmul.mubr.bf16.vlgmr.msra.gmra.mrb[0].mxu1 %v62_v45 }
  0x5b   :  { %870 = vmatpush3.bf16.msra.mxu1 %v994_v46  ;;  %v822_v46 = vld [vmem:[%s1175_s4] ss:$0 sm:$0xff] }
  0x5c   :  { %420 = vmatpush1.bf16.msra.mxu0 %v961_v32  ;;  %871 = vmatprep.subr.bf16.mxu1 %v996_v47 }
  0x5d   :  { %421 = vmatprep.subr.bf16.mxu0 %v963_v33 }
  0x5f   :  { %872 = vmatpush3.bf16.msra.mxu1 %v997_v50 }
  0x60   :  { %422 = vmatpush1.bf16.msra.mxu0 %v966_v36  ;;  %873 = vmatprep.subr.bf16.mxu1 %v999_v51 }
  0x61   :  { %423 = vmatprep.subr.bf16.mxu0 %v968_v38 }
  0x63   :  { %874 = vmatpush3.bf16.msra.mxu1 %v1000_v54 }
  0x64   :  { %424 = vmatpush1.bf16.msra.mxu0 %v971_v43  ;;  %875 = vmatprep.subr.bf16.mxu1 %v1002_v55 }
  0x65   :  { %425 = vmatprep.subr.bf16.mxu0 %v973_v44 }
  0x67   :  { %876 = vmatpush3.bf16.msra.mxu1 %v1003_v58 }
  0x68   :  { %426 = vmatpush1.bf16.msra.mxu0 %v976_v48  ;;  %877 = vmatprep.subr.bf16.mxu1 %v1005_v59 }
  0x69   :  { %427 = vmatprep.subr.bf16.mxu0 %v978_v49 }
  0x6b   :  { %878 = vmatpush3.bf16.msra.mxu1 %v1006_v61 }
  0x6c   :  { %428 = vmatpush1.bf16.msra.mxu0 %v981_v52  ;;  %879 = vmatprep.subr.bf16.mxu1 %v1008_v62 }
  0x6d   :  { %429 = vmatprep.subr.bf16.mxu0 %v983_v53 }
  0x6f   :  { %880 = vmatpush3.bf16.msra.mxu1 %v1009_v0 }
  0x70   :  { %430 = vmatpush1.bf16.msra.mxu0 %v986_v56  ;;  %881 = vmatprep.subr.bf16.mxu1 %v1011_v7 }
  0x71   :  { %431 = vmatprep.subr.bf16.mxu0 %v988_v57 }
  0x73   :  { %882 = vmatpush3.bf16.msra.mxu1 %v1012_v8 }
  0x74   :  { %432 = vmatpush1.bf16.msra.mxu0 %v991_v60  ;;  %883 = vmatprep.subr.bf16.mxu1 %v1014_v10 }
  0x75   :  { %900 = vmatprep.subr.bf16.mxu0 %v1094_v1 }
  0x77   :  { %434 = vmatmul.mubr.bf16.vlgmr.msra.gmra.mrb[0].mxu0 %v62_v45  ;;  %884 = vmatpush3.bf16.msra.mxu1 %v1015_v11 }
  0x78   :  { %901 = vmatpush3.bf16.msra.mxu0 %v995_v63  ;;  %916 = vmatprep.mubr.msk.bf16.mxu0 %vm1095_vm0, %v1094_v1 }
  0x79   :  { %902 = vmatprep.subr.bf16.mxu0 %v1094_v1 }
  0x7c   :  { %903 = vmatpush3.bf16.msra.mxu0 %v998_v2 }
  0x7d   :  { %904 = vmatprep.subr.bf16.mxu0 %v1094_v1 }
  0x80   :  { %905 = vmatpush3.bf16.msra.mxu0 %v1001_v3 }
  0x81   :  { %906 = vmatprep.subr.bf16.mxu0 %v1094_v1 }
  0x84   :  { %907 = vmatpush3.bf16.msra.mxu0 %v1004_v4 }
  0x85   :  { %908 = vmatprep.subr.bf16.mxu0 %v1094_v1 }
  0x88   :  { %909 = vmatpush3.bf16.msra.mxu0 %v1007_v5 }
  0x89   :  { %910 = vmatprep.subr.bf16.mxu0 %v1094_v1 }
  0x8c   :  { %911 = vmatpush3.bf16.msra.mxu0 %v1010_v6 }
  0x8d   :  { %912 = vmatprep.subr.bf16.mxu0 %v1094_v1 }
  0x90   :  { %913 = vmatpush3.bf16.msra.mxu0 %v1013_v9 }
  0x91   :  { %914 = vmatprep.subr.bf16.mxu0 %v1094_v1 }
  0x94   :  { %915 = vmatpush3.bf16.msra.mxu0 %v1016_v12 }
 0x12d   :  { %v863_v17 = vpop.f32.mrb[0].mxu1 }
 0x12e   :  { %v864_v19 = vpop.f32.mrb[1].mxu1 }
 0x12f   :  { %v865_v20 = vadd.f32 %v864_v19, %v863_v17  ;;  %v866_v21 = vpop.f32.mrb[2].mxu1 }
 0x130   :  { %v867_v22 = vpop.f32.mrb[3].mxu1 }
 0x131   :  { %v477_v23 = vadd.f32 %v865_v20, %v141_v18 }
 0x133   :  { %v484_v24 = vmax.f32 %v477_v23, 0.0 }
 0x135   :  { %v487_v25 = vpack.c.bf16 %v484_v24, %v484_v24 }
 0x137   :  { %917 = vmatmul.mubr.bf16.vlgmr.msra.gmra.mrb[4].mxu0 %v487_v25 }
 0x14a   :  { %v435_v30 = vpop.f32.mrb[0].mxu0 }
 0x14b   :  { %v436_v31 = vadd.f32 %v435_v30, %v133_v28  ;;  %v437_v32 = vpop.f32.mrb[1].mxu0 }
 0x14c   :  { %v438_v33 = vadd.f32 %v437_v32, %v137_v29  ;;  %v439_v34 = vpop.f32.mrb[2].mxu0 }
 0x14d   :  { %v482_v35 = vmax.f32 %v436_v31, 0.0  ;;  %v440_v36 = vpop.f32.mrb[3].mxu0 }
 0x14e   :  { %v483_v37 = vmax.f32 %v438_v33, 0.0 }
 0x14f   :  { %v485_v39 = vpack.c.bf16 %v482_v35, %v482_v35 }
 0x150   :  { %v486_v38 = vpack.c.bf16 %v483_v37, %v483_v37 }
 0x152   :  { %719 = vmatprep.mubr.bf16.mxu1 %v486_v38 }
 0x153   :  { %720 = vmatmul.mubr.bf16.vlgmr.msra.gmra.mrb[4].mxu1 %v485_v39 }
 0x20a   :  { %v761_v40 = vpop.f32.mrb[4].mxu0 }
 0x20b   :  { %v918_v41 = vpop.f32.mrb[5].mxu0 }
 0x20c   :  { %v764_v42 = vpop.f32.mrb[6].mxu0 }
 0x20d   :  { %v919_v43 = vpop.f32.mrb[7].mxu0 }
 0x226   :  { %v885_v44 = vpop.f32.mrb[4].mxu1 }
 0x227   :  { %v886_v45 = vpop.f32.mrb[5].mxu1 }
 0x228   :  { %v887_v47 = vadd.f32 %v886_v45, %v885_v44  ;;  %v888_v48 = vpop.f32.mrb[6].mxu1 }
 0x229   :  { %v889_v49 = vpop.f32.mrb[7].mxu1 }
 0x22a   :  { %v722_v50 = vadd.f32 %v887_v47, %v822_v46 }
 0x22c   :  { %v762_v51 = vadd.f32 %v761_v40, %v722_v50 }
 0x22e   :  { %767 = vst [vmem:[%s1176_s5] sm:$0xff] %v762_v51 }
 0x22f   :  { %772 = vsyncpa [#allocation3], 1 }
 0x230   :  { %773 = vsyncpa [#allocation5], 1 }

</bundles_post_ra>
